<compile_context>
chip_gen: v5e
topology: v5e:2x2
jax: 0.10.0
libtpu: 0.0.40
codegen_flags: <defaults>
</compile_context>

<pallas_src>
import math

import jax
import jax.numpy as jnp
from jax import lax
from jax.experimental import pallas as pl
from jax.experimental.pallas import tpu as pltpu

_EPS = 1e-5
_K = 3                       # kernel_size; padding = _K // 2 ("same")
_SQRT1_2 = 1.0 / math.sqrt(2.0)


def _erf_approx(x):
    """Abramowitz & Stegun 7.1.26 erf approximation, |abs err| <= 1.5e-7."""
    p = 0.3275911
    a1, a2, a3, a4, a5 = (0.254829592, -0.284496736, 1.421413741,
                          -1.453152027, 1.061405429)
    ax = jnp.abs(x)
    t = 1.0 / (1.0 + p * ax)
    poly = ((((a5 * t + a4) * t + a3) * t + a2) * t + a1) * t
    y = 1.0 - poly * jnp.exp(-(ax * ax))
    return jnp.where(x < 0, -y, y)


def _gelu(x):
    # nn.GELU() default: exact erf-based GELU (to ~1.5e-7 via _erf_approx).
    return 0.5 * x * (1.0 + _erf_approx(x * _SQRT1_2))


def _choose_tb(B, L):
    """Batch elements per grid step.

    A (C, TB*L) tile must either span the whole lane axis (TB == B) or be a
    multiple of 128 lanes ((8,128) block rule).  Prefer >= 2 grid blocks (both
    v7x TensorCores) as long as each block stays reasonably lane-dense.
    """
    MAX_LANES, MIN_LANES = 4096, 512
    divisors = [d for d in range(1, B + 1) if B % d == 0]
    tileable = [d for d in divisors if d == B or (d * L) % 128 == 0]
    small = [d for d in tileable if d * L <= MAX_LANES]
    cands = small if small else [min(tileable)]
    multi = [d for d in cands if B // d >= 2 and d * L >= MIN_LANES]
    return max(multi) if multi else max(cands)


def _bn_fold(st, gamma, beta, n_block, n_total):
    """Fold training-mode BatchNorm1d into per-channel scale/shift.

    st: (nb, C, 2) per-block partials [sum, centered M2], merged with the
    Chan et al. parallel-variance formula.  Biased variance, eps=1e-5.
    """
    sums = st[:, :, 0]                                  # (nb, C)
    m2s = st[:, :, 1]                                   # (nb, C)
    mean_b = sums / n_block
    mean = jnp.sum(sums, axis=0) / n_total              # (C,)
    m2 = jnp.sum(m2s, axis=0) + n_block * jnp.sum((mean_b - mean[None, :]) ** 2, axis=0)
    var = jnp.maximum(m2 / n_total, 0.0)
    scale = gamma.astype(jnp.float32) * lax.rsqrt(var + _EPS)
    shift = beta.astype(jnp.float32) - mean * scale
    C = mean.shape[0]
    return scale.reshape(C, 1), shift.reshape(C, 1)


def resblock_forward(x_bcl, params):
    """x_bcl: (B, C, L) float32, PyTorch Conv1d layout. Returns (B, C, L)."""
    w1, b1, g1, beta1, w2, b2, g2, beta2 = params
    del b1, b2  # conv biases cancel exactly against training-mode BN mean subtraction
    B, C, L = x_bcl.shape
    N = B * L

    # Lane-dense folded layout: (B, C, L) -> (C, B*L).
    x = x_bcl.astype(jnp.float32).transpose(1, 0, 2).reshape(C, N)

    # Weights as (K, C_out, C_in): one (C_out, C_in) MXU matmul per tap.
    w1r = jnp.transpose(w1.astype(jnp.float32), (2, 0, 1))
    w2r = jnp.transpose(w2.astype(jnp.float32), (2, 0, 1))

    TB = _choose_tb(B, L)                # batch elements per grid step
    TN = TB * L                          # lanes per tile (multiple of L)
    nb = N // TN                         # grid size (batch blocks)
    inv_tn = 1.0 / float(TN)

    def conv3(h, w_ref):
        """3-tap 'same' Conv1d over the lane axis on the MXU, batch folded into lanes.

        h: (C, TN) f32.  w_ref: (3, C_out, C_in) ref.  The +/-1 lane shifts are
        zeroed at every length-L segment boundary, which both implements the
        conv's zero padding and keeps folded batch elements independent.
        Bias-free: the following training-mode BN cancels any bias exactly.
        """
        pos = lax.broadcasted_iota(jnp.int32, (1, TN), 1) % L
        zc = jnp.zeros((C, 1), jnp.float32)
        h_m1 = jnp.where(pos == 0, 0.0, jnp.concatenate([zc, h[:, :TN - 1]], axis=1))
        h_p1 = jnp.where(pos == L - 1, 0.0, jnp.concatenate([h[:, 1:], zc], axis=1))
        y = jnp.dot(w_ref[0], h_m1, preferred_element_type=jnp.float32)
        y = y + jnp.dot(w_ref[1], h, preferred_element_type=jnp.float32)
        y = y + jnp.dot(w_ref[2], h_p1, preferred_element_type=jnp.float32)
        return y

    def block_stats(y):
        """Per-channel (sum, centered M2) over this block's TN lanes -> (C, 2).

        The 2-wide lane dim means a tiny masked store per block; accepted
        because the volume is negligible and it keeps the batch-block axis
        free of resident accumulators (stays megacore-"parallel").
        """
        s = jnp.sum(y, axis=1, keepdims=True)
        d = y - s * inv_tn
        m2 = jnp.sum(d * d, axis=1, keepdims=True)
        return jnp.concatenate([s, m2], axis=1)

    # pass 1: conv1 -> partial BN1 stats.  (y1 never goes to HBM; recomputed later.)
    def stats1_kernel(x_ref, w1_ref, st_ref):
        st_ref[0] = block_stats(conv3(x_ref[...], w1_ref))

    # pass 2: recompute conv1, bn1 + GELU, conv2 -> partial BN2 stats.
    def stats2_kernel(x_ref, w1_ref, w2_ref, s1_ref, t1_ref, st_ref):
        h = conv3(x_ref[...], w1_ref)
        h = _gelu(h * s1_ref[...] + t1_ref[...])
        st_ref[0] = block_stats(conv3(h, w2_ref))

    # pass 3: recompute conv1/bn1/GELU/conv2, then bn2 + skip + GELU -> output.
    def out_kernel(x_ref, w1_ref, w2_ref, s1_ref, t1_ref, s2_ref, t2_ref, o_ref):
        xb = x_ref[...]
        h = conv3(xb, w1_ref)
        h = _gelu(h * s1_ref[...] + t1_ref[...])
        h = conv3(h, w2_ref)
        o_ref[...] = _gelu(h * s2_ref[...] + t2_ref[...] + xb)

    act_spec = pl.BlockSpec((C, TN), lambda i: (0, i))        # lane-dense tile
    w_spec = pl.BlockSpec((_K, C, C), lambda i: (0, 0, 0))    # resident across grid
    cs_spec = pl.BlockSpec((C, 1), lambda i: (0, 0))          # per-channel scale/shift
    st_spec = pl.BlockSpec((1, C, 2), lambda i: (i, 0, 0))    # per-block partials
    st_shape = jax.ShapeDtypeStruct((nb, C, 2), jnp.float32)

    cparams = pltpu.CompilerParams(
        dimension_semantics=("parallel",),     # per-block outputs only -> megacore-safe
        vmem_limit_bytes=32 * 1024 * 1024,     # modest; fits v7x's 64 MiB with headroom
    )

    st1 = pl.pallas_call(
        stats1_kernel,
        grid=(nb,),
        in_specs=[act_spec, w_spec],
        out_specs=st_spec,
        out_shape=st_shape,
        compiler_params=cparams,
    )(x, w1r)
    scale1, shift1 = _bn_fold(st1, g1, beta1, TN, N)

    st2 = pl.pallas_call(
        stats2_kernel,
        grid=(nb,),
        in_specs=[act_spec, w_spec, w_spec, cs_spec, cs_spec],
        out_specs=st_spec,
        out_shape=st_shape,
        compiler_params=cparams,
    )(x, w1r, w2r, scale1, shift1)
    scale2, shift2 = _bn_fold(st2, g2, beta2, TN, N)

    out = pl.pallas_call(
        out_kernel,
        grid=(nb,),
        in_specs=[act_spec, w_spec, w_spec, cs_spec, cs_spec, cs_spec, cs_spec],
        out_specs=act_spec,
        out_shape=jax.ShapeDtypeStruct((C, N), jnp.float32),
        compiler_params=cparams,
    )(x, w1r, w2r, scale1, shift1, scale2, shift2)

    return out.reshape(C, B, L).transpose(1, 0, 2)


def _torch_like_ref(x, params):
    """Pure-JAX reference matching nn.Conv1d / training-mode nn.BatchNorm1d / nn.GELU."""
    w1, b1, g1, beta1, w2, b2, g2, beta2 = params

    def conv(h, w, b):
        y = lax.conv_general_dilated(
            h, w, window_strides=(1,), padding=[(1, 1)],
            dimension_numbers=('NCH', 'OIH', 'NCH'),
            precision=lax.Precision.HIGHEST)
        return y + b[None, :, None]

    def bn(h, g, beta):
        mean = h.mean(axis=(0, 2), keepdims=True)
        var = ((h - mean) ** 2).mean(axis=(0, 2), keepdims=True)
        return (h - mean) / jnp.sqrt(var + _EPS) * g[None, :, None] + beta[None, :, None]

    gelu = lambda t: 0.5 * t * (1.0 + lax.erf(t / jnp.sqrt(2.0)))
    skip = x
    h = gelu(bn(conv(x, w1, b1), g1, beta1))
    h = bn(conv(h, w2, b2), g2, beta2)
    return gelu(h + skip)


if __name__ == "__main__":
    B, C, L = 2, 4, 16
    key = jax.random.PRNGKey(0)
    kx, k1, k2, k3, k4 = jax.random.split(key, 5)

    x = jax.random.normal(kx, (B, C, L), jnp.float32)

    # Deterministic synthetic parameters (PyTorch-like uniform init for conv, 1/0 for BN)
    bound = 1.0 / math.sqrt(C * _K)
    w1 = jax.random.uniform(k1, (C, C, _K), jnp.float32, -bound, bound)
    b1 = jax.random.uniform(k2, (C,), jnp.float32, -bound, bound)
    w2 = jax.random.uniform(k3, (C, C, _K), jnp.float32, -bound, bound)
    b2 = jax.random.uniform(k4, (C,), jnp.float32, -bound, bound)
    g1 = jnp.ones((C,), jnp.float32)
    beta1 = jnp.zeros((C,), jnp.float32)
    g2 = jnp.ones((C,), jnp.float32)
    beta2 = jnp.zeros((C,), jnp.float32)
    params = (w1, b1, g1, beta1, w2, b2, g2, beta2)

    fwd = jax.jit(resblock_forward)
    out = jax.block_until_ready(fwd(x, params))
    ref = _torch_like_ref(x, params)

    assert out.shape == (B, C, L)
    max_err = float(jnp.max(jnp.abs(out - ref)))
    # Tolerance covers MXU f32 matmul precision modes + the 1.5e-7 erf approx;
    # a real logic bug (mask/BN/shift) would produce O(0.1+) errors.
    assert max_err < 2e-3, f"max abs err {max_err}"
    print("KERNEL_OK")
</pallas_src>

<mosaic_0001>
module attributes {stable_mosaic.version = 11 : i64} {
  func.func @stats1_kernel(%arg0: i32, %arg1: memref<4x32xf32, #tpu.memory_space<vmem>>, %arg2: memref<3x4x4xf32, #tpu.memory_space<vmem>>, %arg3: memref<1x4x2xf32, #tpu.memory_space<vmem>>) attributes {dimension_semantics = [#tpu.dimension_semantics<parallel>], iteration_bounds = array<i64: 1>, scalar_prefetch = 0 : i64, scratch_operands = 0 : i64, tpu.core_type = #tpu.core_type<tc>, window_params = [{transform_indices = @transform_0, window_bounds = array<i64: 4, 32>}, {pipeline_mode = #tpu.pipeline_mode<synchronous>, transform_indices = @transform_1, window_bounds = array<i64: 3, 4, 4>}, {transform_indices = @transform_2, window_bounds = array<i64: 1, 4, 2>}]} {
    %c0 = arith.constant 0 : index
    %c0_0 = arith.constant 0 : index
    %0 = vector.load %arg1[%c0, %c0_0] : memref<4x32xf32, #tpu.memory_space<vmem>>, vector<4x32xf32>
    %1 = tpu.iota {dimensions = array<i32: 1>} : vector<1x32xi32>
    %c16_i32 = arith.constant 16 : i32
    %c0_i32 = arith.constant 0 : i32
    %2 = arith.cmpi eq, %c16_i32, %c0_i32 : i32
    %c1_i32 = arith.constant 1 : i32
    %3 = arith.select %2, %c1_i32, %c16_i32 : i32
    %4 = vector.broadcast %3 : i32 to vector<1x32xi32>
    %5 = arith.remsi %1, %4 : vector<1x32xi32>
    %c0_i32_1 = arith.constant 0 : i32
    %6 = vector.broadcast %c0_i32_1 : i32 to vector<1x32xi32>
    %7 = arith.cmpi ne, %5, %6 : vector<1x32xi32>
    %c0_i32_2 = arith.constant 0 : i32
    %8 = vector.broadcast %c0_i32_2 : i32 to vector<1x32xi32>
    %9 = arith.cmpi slt, %5, %8 : vector<1x32xi32>
    %c0_i32_3 = arith.constant 0 : i32
    %10 = arith.cmpi slt, %3, %c0_i32_3 : i32
    %11 = vector.broadcast %10 : i1 to vector<1x32xi1>
    %12 = vector.broadcast %11 : vector<1x32xi1> to vector<1x32xi1>
    %13 = arith.xori %9, %12 : vector<1x32xi1>
    %14 = arith.andi %13, %7 : vector<1x32xi1>
    %15 = vector.broadcast %3 : i32 to vector<1x32xi32>
    %16 = arith.addi %5, %15 : vector<1x32xi32>
    %17 = arith.select %14, %16, %5 : vector<1x32xi1>, vector<1x32xi32>
    %cst = arith.constant 0.000000e+00 : f32
    %18 = vector.broadcast %cst : f32 to vector<4x1xf32>
    %c0_i32_4 = arith.constant 0 : i32
    %19 = vector.broadcast %c0_i32_4 : i32 to vector<1x32xi32>
    %20 = arith.cmpi eq, %17, %19 : vector<1x32xi32>
    %21 = vector.extract_strided_slice %0 {offsets = [0, 0], sizes = [4, 31], strides = [1, 1]} : vector<4x32xf32> to vector<4x31xf32>
    %22 = tpu.concatenate %18, %21 in 1 : vector<4x1xf32>, vector<4x31xf32> -> vector<4x32xf32>
    %cst_5 = arith.constant 0.000000e+00 : f32
    %23 = vector.shape_cast %20 : vector<1x32xi1> to vector<1x32xi1>
    %24 = vector.broadcast %23 : vector<1x32xi1> to vector<4x32xi1>
    %25 = vector.broadcast %cst_5 : f32 to vector<4x32xf32>
    %26 = arith.select %24, %25, %22 : vector<4x32xi1>, vector<4x32xf32>
    %c15_i32 = arith.constant 15 : i32
    %27 = vector.broadcast %c15_i32 : i32 to vector<1x32xi32>
    %28 = arith.cmpi eq, %17, %27 : vector<1x32xi32>
    %29 = vector.extract_strided_slice %0 {offsets = [0, 1], sizes = [4, 31], strides = [1, 1]} : vector<4x32xf32> to vector<4x31xf32>
    %30 = tpu.concatenate %29, %18 in 1 : vector<4x31xf32>, vector<4x1xf32> -> vector<4x32xf32>
    %cst_6 = arith.constant 0.000000e+00 : f32
    %31 = vector.shape_cast %28 : vector<1x32xi1> to vector<1x32xi1>
    %32 = vector.broadcast %31 : vector<1x32xi1> to vector<4x32xi1>
    %33 = vector.broadcast %cst_6 : f32 to vector<4x32xf32>
    %34 = arith.select %32, %33, %30 : vector<4x32xi1>, vector<4x32xf32>
    %c0_7 = arith.constant 0 : index
    %c0_8 = arith.constant 0 : index
    %c0_9 = arith.constant 0 : index
    %35 = vector.load %arg2[%c0_7, %c0_8, %c0_9] : memref<3x4x4xf32, #tpu.memory_space<vmem>>, vector<1x4x4xf32>
    %36 = vector.shape_cast %35 : vector<1x4x4xf32> to vector<4x4xf32>
    %cst_10 = arith.constant dense<0.000000e+00> : vector<4x32xf32>
    %37 = tpu.matmul %36, %26, %cst_10 {dimension_numbers = #tpu.dot_dimension_numbers<[1], [0], [0], [1], [0, 0, 1, 1], [], []>} : vector<4x4xf32>, vector<4x32xf32>, vector<4x32xf32> -> vector<4x32xf32>
    %c1 = arith.constant 1 : index
    %c0_11 = arith.constant 0 : index
    %c0_12 = arith.constant 0 : index
    %38 = vector.load %arg2[%c1, %c0_11, %c0_12] : memref<3x4x4xf32, #tpu.memory_space<vmem>>, vector<1x4x4xf32>
    %39 = vector.shape_cast %38 : vector<1x4x4xf32> to vector<4x4xf32>
    %cst_13 = arith.constant dense<0.000000e+00> : vector<4x32xf32>
    %40 = tpu.matmul %39, %0, %cst_13 {dimension_numbers = #tpu.dot_dimension_numbers<[1], [0], [0], [1], [0, 0, 1, 1], [], []>} : vector<4x4xf32>, vector<4x32xf32>, vector<4x32xf32> -> vector<4x32xf32>
    %41 = arith.addf %37, %40 : vector<4x32xf32>
    %c2 = arith.constant 2 : index
    %c0_14 = arith.constant 0 : index
    %c0_15 = arith.constant 0 : index
    %42 = vector.load %arg2[%c2, %c0_14, %c0_15] : memref<3x4x4xf32, #tpu.memory_space<vmem>>, vector<1x4x4xf32>
    %43 = vector.shape_cast %42 : vector<1x4x4xf32> to vector<4x4xf32>
    %cst_16 = arith.constant dense<0.000000e+00> : vector<4x32xf32>
    %44 = tpu.matmul %43, %34, %cst_16 {dimension_numbers = #tpu.dot_dimension_numbers<[1], [0], [0], [1], [0, 0, 1, 1], [], []>} : vector<4x4xf32>, vector<4x32xf32>, vector<4x32xf32> -> vector<4x32xf32>
    %45 = arith.addf %41, %44 : vector<4x32xf32>
    %cst_17 = arith.constant dense<0.000000e+00> : vector<4xf32>
    %46 = vector.multi_reduction <add>, %45, %cst_17 [1] : vector<4x32xf32> to vector<4xf32>
    %47 = vector.shape_cast %46 : vector<4xf32> to vector<4x1xf32>
    %cst_18 = arith.constant 3.125000e-02 : f32
    %48 = vector.broadcast %cst_18 : f32 to vector<4x1xf32>
    %49 = arith.mulf %47, %48 : vector<4x1xf32>
    %50 = vector.broadcast %49 : vector<4x1xf32> to vector<4x32xf32>
    %51 = arith.subf %45, %50 : vector<4x32xf32>
    %52 = arith.mulf %51, %51 : vector<4x32xf32>
    %cst_19 = arith.constant dense<0.000000e+00> : vector<4xf32>
    %53 = vector.multi_reduction <add>, %52, %cst_19 [1] : vector<4x32xf32> to vector<4xf32>
    %54 = vector.shape_cast %53 : vector<4xf32> to vector<4x1xf32>
    %55 = tpu.concatenate %47, %54 in 1 : vector<4x1xf32>, vector<4x1xf32> -> vector<4x2xf32>
    %c0_20 = arith.constant 0 : index
    %c0_21 = arith.constant 0 : index
    %c0_22 = arith.constant 0 : index
    %56 = vector.load %arg3[%c0_20, %c0_21, %c0_22] : memref<1x4x2xf32, #tpu.memory_space<vmem>>, vector<1x4x2xf32>
    %57 = vector.shape_cast %56 : vector<1x4x2xf32> to vector<4x2xf32>
    %58 = vector.shape_cast %55 : vector<4x2xf32> to vector<1x4x2xf32>
    tpu.vector_store %arg3[%c0_20, %c0_21, %c0_22], %58 {strides = array<i32>} : memref<1x4x2xf32, #tpu.memory_space<vmem>>, vector<1x4x2xf32>,
    return
  }
  func.func @transform_0(%arg0: i32) -> (i32, i32) {
    %c0_i32 = arith.constant 0 : i32
    %c0_i32_0 = arith.constant 0 : i32
    return %c0_i32, %arg0 : i32, i32
  }
  func.func @transform_1(%arg0: i32) -> (i32, i32, i32) {
    %c0_i32 = arith.constant 0 : i32
    %c0_i32_0 = arith.constant 0 : i32
    %c0_i32_1 = arith.constant 0 : i32
    %c0_i32_2 = arith.constant 0 : i32
    return %c0_i32, %c0_i32_0, %c0_i32_1 : i32, i32, i32
  }
  func.func @transform_2(%arg0: i32) -> (i32, i32, i32) {
    %c0_i32 = arith.constant 0 : i32
    %c0_i32_0 = arith.constant 0 : i32
    %c0_i32_1 = arith.constant 0 : i32
    return %arg0, %c0_i32, %c0_i32_0 : i32, i32, i32
  }
}

module attributes {stable_mosaic.version = 11 : i64} {
  func.func @stats2_kernel(%arg0: i32, %arg1: memref<4x32xf32, #tpu.memory_space<vmem>>, %arg2: memref<3x4x4xf32, #tpu.memory_space<vmem>>, %arg3: memref<3x4x4xf32, #tpu.memory_space<vmem>>, %arg4: memref<4x1xf32, #tpu.memory_space<vmem>>, %arg5: memref<4x1xf32, #tpu.memory_space<vmem>>, %arg6: memref<1x4x2xf32, #tpu.memory_space<vmem>>) attributes {dimension_semantics = [#tpu.dimension_semantics<parallel>], iteration_bounds = array<i64: 1>, scalar_prefetch = 0 : i64, scratch_operands = 0 : i64, tpu.core_type = #tpu.core_type<tc>, window_params = [{transform_indices = @transform_0, window_bounds = array<i64: 4, 32>}, {pipeline_mode = #tpu.pipeline_mode<synchronous>, transform_indices = @transform_1, window_bounds = array<i64: 3, 4, 4>}, {pipeline_mode = #tpu.pipeline_mode<synchronous>, transform_indices = @transform_2, window_bounds = array<i64: 3, 4, 4>}, {pipeline_mode = #tpu.pipeline_mode<synchronous>, transform_indices = @transform_3, window_bounds = array<i64: 4, 1>}, {pipeline_mode = #tpu.pipeline_mode<synchronous>, transform_indices = @transform_4, window_bounds = array<i64: 4, 1>}, {transform_indices = @transform_5, window_bounds = array<i64: 1, 4, 2>}]} {
    %c0 = arith.constant 0 : index
    %c0_0 = arith.constant 0 : index
    %0 = vector.load %arg1[%c0, %c0_0] : memref<4x32xf32, #tpu.memory_space<vmem>>, vector<4x32xf32>
    %1 = tpu.iota {dimensions = array<i32: 1>} : vector<1x32xi32>
    %c16_i32 = arith.constant 16 : i32
    %c0_i32 = arith.constant 0 : i32
    %2 = arith.cmpi eq, %c16_i32, %c0_i32 : i32
    %c1_i32 = arith.constant 1 : i32
    %3 = arith.select %2, %c1_i32, %c16_i32 : i32
    %4 = vector.broadcast %3 : i32 to vector<1x32xi32>
    %5 = arith.remsi %1, %4 : vector<1x32xi32>
    %c0_i32_1 = arith.constant 0 : i32
    %6 = vector.broadcast %c0_i32_1 : i32 to vector<1x32xi32>
    %7 = arith.cmpi ne, %5, %6 : vector<1x32xi32>
    %c0_i32_2 = arith.constant 0 : i32
    %8 = vector.broadcast %c0_i32_2 : i32 to vector<1x32xi32>
    %9 = arith.cmpi slt, %5, %8 : vector<1x32xi32>
    %c0_i32_3 = arith.constant 0 : i32
    %10 = arith.cmpi slt, %3, %c0_i32_3 : i32
    %11 = vector.broadcast %10 : i1 to vector<1x32xi1>
    %12 = vector.broadcast %11 : vector<1x32xi1> to vector<1x32xi1>
    %13 = arith.xori %9, %12 : vector<1x32xi1>
    %14 = arith.andi %13, %7 : vector<1x32xi1>
    %15 = vector.broadcast %3 : i32 to vector<1x32xi32>
    %16 = arith.addi %5, %15 : vector<1x32xi32>
    %17 = arith.select %14, %16, %5 : vector<1x32xi1>, vector<1x32xi32>
    %cst = arith.constant 0.000000e+00 : f32
    %18 = vector.broadcast %cst : f32 to vector<4x1xf32>
    %c0_i32_4 = arith.constant 0 : i32
    %19 = vector.broadcast %c0_i32_4 : i32 to vector<1x32xi32>
    %20 = arith.cmpi eq, %17, %19 : vector<1x32xi32>
    %21 = vector.extract_strided_slice %0 {offsets = [0, 0], sizes = [4, 31], strides = [1, 1]} : vector<4x32xf32> to vector<4x31xf32>
    %22 = tpu.concatenate %18, %21 in 1 : vector<4x1xf32>, vector<4x31xf32> -> vector<4x32xf32>
    %cst_5 = arith.constant 0.000000e+00 : f32
    %23 = vector.shape_cast %20 : vector<1x32xi1> to vector<1x32xi1>
    %24 = vector.broadcast %23 : vector<1x32xi1> to vector<4x32xi1>
    %25 = vector.broadcast %cst_5 : f32 to vector<4x32xf32>
    %26 = arith.select %24, %25, %22 : vector<4x32xi1>, vector<4x32xf32>
    %c15_i32 = arith.constant 15 : i32
    %27 = vector.broadcast %c15_i32 : i32 to vector<1x32xi32>
    %28 = arith.cmpi eq, %17, %27 : vector<1x32xi32>
    %29 = vector.extract_strided_slice %0 {offsets = [0, 1], sizes = [4, 31], strides = [1, 1]} : vector<4x32xf32> to vector<4x31xf32>
    %30 = tpu.concatenate %29, %18 in 1 : vector<4x31xf32>, vector<4x1xf32> -> vector<4x32xf32>
    %cst_6 = arith.constant 0.000000e+00 : f32
    %31 = vector.shape_cast %28 : vector<1x32xi1> to vector<1x32xi1>
    %32 = vector.broadcast %31 : vector<1x32xi1> to vector<4x32xi1>
    %33 = vector.broadcast %cst_6 : f32 to vector<4x32xf32>
    %34 = arith.select %32, %33, %30 : vector<4x32xi1>, vector<4x32xf32>
    %c0_7 = arith.constant 0 : index
    %c0_8 = arith.constant 0 : index
    %c0_9 = arith.constant 0 : index
    %35 = vector.load %arg2[%c0_7, %c0_8, %c0_9] : memref<3x4x4xf32, #tpu.memory_space<vmem>>, vector<1x4x4xf32>
    %36 = vector.shape_cast %35 : vector<1x4x4xf32> to vector<4x4xf32>
    %cst_10 = arith.constant dense<0.000000e+00> : vector<4x32xf32>
    %37 = tpu.matmul %36, %26, %cst_10 {dimension_numbers = #tpu.dot_dimension_numbers<[1], [0], [0], [1], [0, 0, 1, 1], [], []>} : vector<4x4xf32>, vector<4x32xf32>, vector<4x32xf32> -> vector<4x32xf32>
    %c1 = arith.constant 1 : index
    %c0_11 = arith.constant 0 : index
    %c0_12 = arith.constant 0 : index
    %38 = vector.load %arg2[%c1, %c0_11, %c0_12] : memref<3x4x4xf32, #tpu.memory_space<vmem>>, vector<1x4x4xf32>
    %39 = vector.shape_cast %38 : vector<1x4x4xf32> to vector<4x4xf32>
    %cst_13 = arith.constant dense<0.000000e+00> : vector<4x32xf32>
    %40 = tpu.matmul %39, %0, %cst_13 {dimension_numbers = #tpu.dot_dimension_numbers<[1], [0], [0], [1], [0, 0, 1, 1], [], []>} : vector<4x4xf32>, vector<4x32xf32>, vector<4x32xf32> -> vector<4x32xf32>
    %41 = arith.addf %37, %40 : vector<4x32xf32>
    %c2 = arith.constant 2 : index
    %c0_14 = arith.constant 0 : index
    %c0_15 = arith.constant 0 : index
    %42 = vector.load %arg2[%c2, %c0_14, %c0_15] : memref<3x4x4xf32, #tpu.memory_space<vmem>>, vector<1x4x4xf32>
    %43 = vector.shape_cast %42 : vector<1x4x4xf32> to vector<4x4xf32>
    %cst_16 = arith.constant dense<0.000000e+00> : vector<4x32xf32>
    %44 = tpu.matmul %43, %34, %cst_16 {dimension_numbers = #tpu.dot_dimension_numbers<[1], [0], [0], [1], [0, 0, 1, 1], [], []>} : vector<4x4xf32>, vector<4x32xf32>, vector<4x32xf32> -> vector<4x32xf32>
    %45 = arith.addf %41, %44 : vector<4x32xf32>
    %c0_17 = arith.constant 0 : index
    %c0_18 = arith.constant 0 : index
    %46 = vector.load %arg4[%c0_17, %c0_18] : memref<4x1xf32, #tpu.memory_space<vmem>>, vector<4x1xf32>
    %47 = vector.broadcast %46 : vector<4x1xf32> to vector<4x32xf32>
    %48 = arith.mulf %45, %47 : vector<4x32xf32>
    %c0_19 = arith.constant 0 : index
    %c0_20 = arith.constant 0 : index
    %49 = vector.load %arg5[%c0_19, %c0_20] : memref<4x1xf32, #tpu.memory_space<vmem>>, vector<4x1xf32>
    %50 = vector.broadcast %49 : vector<4x1xf32> to vector<4x32xf32>
    %51 = arith.addf %48, %50 : vector<4x32xf32>
    %cst_21 = arith.constant 5.000000e-01 : f32
    %52 = vector.broadcast %cst_21 : f32 to vector<4x32xf32>
    %53 = arith.mulf %52, %51 : vector<4x32xf32>
    %cst_22 = arith.constant 0.707106769 : f32
    %54 = vector.broadcast %cst_22 : f32 to vector<4x32xf32>
    %55 = arith.mulf %51, %54 : vector<4x32xf32>
    %56 = math.absf %55 : vector<4x32xf32>
    %cst_23 = arith.constant 0.327591091 : f32
    %57 = vector.broadcast %cst_23 : f32 to vector<4x32xf32>
    %58 = arith.mulf %57, %56 : vector<4x32xf32>
    %cst_24 = arith.constant 1.000000e+00 : f32
    %59 = vector.broadcast %cst_24 : f32 to vector<4x32xf32>
    %60 = arith.addf %59, %58 : vector<4x32xf32>
    %cst_25 = arith.constant 1.000000e+00 : f32
    %61 = vector.broadcast %cst_25 : f32 to vector<4x32xf32>
    %62 = arith.divf %61, %60 : vector<4x32xf32>
    %cst_26 = arith.constant 1.06140542 : f32
    %63 = vector.broadcast %cst_26 : f32 to vector<4x32xf32>
    %64 = arith.mulf %63, %62 : vector<4x32xf32>
    %cst_27 = arith.constant -1.45315206 : f32
    %65 = vector.broadcast %cst_27 : f32 to vector<4x32xf32>
    %66 = arith.addf %64, %65 : vector<4x32xf32>
    %67 = arith.mulf %66, %62 : vector<4x32xf32>
    %cst_28 = arith.constant 1.42141378 : f32
    %68 = vector.broadcast %cst_28 : f32 to vector<4x32xf32>
    %69 = arith.addf %67, %68 : vector<4x32xf32>
    %70 = arith.mulf %69, %62 : vector<4x32xf32>
    %cst_29 = arith.constant -0.284496725 : f32
    %71 = vector.broadcast %cst_29 : f32 to vector<4x32xf32>
    %72 = arith.addf %70, %71 : vector<4x32xf32>
    %73 = arith.mulf %72, %62 : vector<4x32xf32>
    %cst_30 = arith.constant 0.254829586 : f32
    %74 = vector.broadcast %cst_30 : f32 to vector<4x32xf32>
    %75 = arith.addf %73, %74 : vector<4x32xf32>
    %76 = arith.mulf %75, %62 : vector<4x32xf32>
    %77 = arith.mulf %56, %56 : vector<4x32xf32>
    %cst_31 = arith.constant 0.000000e+00 : f32
    %78 = vector.broadcast %cst_31 : f32 to vector<4x32xf32>
    %79 = arith.subf %78, %77 : vector<4x32xf32>
    %80 = math.exp %79 : vector<4x32xf32>
    %81 = arith.mulf %76, %80 : vector<4x32xf32>
    %cst_32 = arith.constant 1.000000e+00 : f32
    %82 = vector.broadcast %cst_32 : f32 to vector<4x32xf32>
    %83 = arith.subf %82, %81 : vector<4x32xf32>
    %cst_33 = arith.constant 0.000000e+00 : f32
    %84 = vector.broadcast %cst_33 : f32 to vector<4x32xf32>
    %85 = arith.cmpf olt, %55, %84 : vector<4x32xf32>
    %cst_34 = arith.constant 0.000000e+00 : f32
    %86 = vector.broadcast %cst_34 : f32 to vector<4x32xf32>
    %87 = arith.subf %86, %83 : vector<4x32xf32>
    %88 = arith.select %85, %87, %83 : vector<4x32xi1>, vector<4x32xf32>
    %cst_35 = arith.constant 1.000000e+00 : f32
    %89 = vector.broadcast %cst_35 : f32 to vector<4x32xf32>
    %90 = arith.addf %89, %88 : vector<4x32xf32>
    %91 = arith.mulf %53, %90 : vector<4x32xf32>
    %92 = tpu.iota {dimensions = array<i32: 1>} : vector<1x32xi32>
    %c16_i32_36 = arith.constant 16 : i32
    %c0_i32_37 = arith.constant 0 : i32
    %93 = arith.cmpi eq, %c16_i32_36, %c0_i32_37 : i32
    %c1_i32_38 = arith.constant 1 : i32
    %94 = arith.select %93, %c1_i32_38, %c16_i32_36 : i32
    %95 = vector.broadcast %94 : i32 to vector<1x32xi32>
    %96 = arith.remsi %92, %95 : vector<1x32xi32>
    %c0_i32_39 = arith.constant 0 : i32
    %97 = vector.broadcast %c0_i32_39 : i32 to vector<1x32xi32>
    %98 = arith.cmpi ne, %96, %97 : vector<1x32xi32>
    %c0_i32_40 = arith.constant 0 : i32
    %99 = vector.broadcast %c0_i32_40 : i32 to vector<1x32xi32>
    %100 = arith.cmpi slt, %96, %99 : vector<1x32xi32>
    %c0_i32_41 = arith.constant 0 : i32
    %101 = arith.cmpi slt, %94, %c0_i32_41 : i32
    %102 = vector.broadcast %101 : i1 to vector<1x32xi1>
    %103 = vector.broadcast %102 : vector<1x32xi1> to vector<1x32xi1>
    %104 = arith.xori %100, %103 : vector<1x32xi1>
    %105 = arith.andi %104, %98 : vector<1x32xi1>
    %106 = vector.broadcast %94 : i32 to vector<1x32xi32>
    %107 = arith.addi %96, %106 : vector<1x32xi32>
    %108 = arith.select %105, %107, %96 : vector<1x32xi1>, vector<1x32xi32>
    %cst_42 = arith.constant 0.000000e+00 : f32
    %109 = vector.broadcast %cst_42 : f32 to vector<4x1xf32>
    %c0_i32_43 = arith.constant 0 : i32
    %110 = vector.broadcast %c0_i32_43 : i32 to vector<1x32xi32>
    %111 = arith.cmpi eq, %108, %110 : vector<1x32xi32>
    %112 = vector.extract_strided_slice %91 {offsets = [0, 0], sizes = [4, 31], strides = [1, 1]} : vector<4x32xf32> to vector<4x31xf32>
    %113 = tpu.concatenate %109, %112 in 1 : vector<4x1xf32>, vector<4x31xf32> -> vector<4x32xf32>
    %cst_44 = arith.constant 0.000000e+00 : f32
    %114 = vector.shape_cast %111 : vector<1x32xi1> to vector<1x32xi1>
    %115 = vector.broadcast %114 : vector<1x32xi1> to vector<4x32xi1>
    %116 = vector.broadcast %cst_44 : f32 to vector<4x32xf32>
    %117 = arith.select %115, %116, %113 : vector<4x32xi1>, vector<4x32xf32>
    %c15_i32_45 = arith.constant 15 : i32
    %118 = vector.broadcast %c15_i32_45 : i32 to vector<1x32xi32>
    %119 = arith.cmpi eq, %108, %118 : vector<1x32xi32>
    %120 = vector.extract_strided_slice %91 {offsets = [0, 1], sizes = [4, 31], strides = [1, 1]} : vector<4x32xf32> to vector<4x31xf32>
    %121 = tpu.concatenate %120, %109 in 1 : vector<4x31xf32>, vector<4x1xf32> -> vector<4x32xf32>
    %cst_46 = arith.constant 0.000000e+00 : f32
    %122 = vector.shape_cast %119 : vector<1x32xi1> to vector<1x32xi1>
    %123 = vector.broadcast %122 : vector<1x32xi1> to vector<4x32xi1>
    %124 = vector.broadcast %cst_46 : f32 to vector<4x32xf32>
    %125 = arith.select %123, %124, %121 : vector<4x32xi1>, vector<4x32xf32>
    %c0_47 = arith.constant 0 : index
    %c0_48 = arith.constant 0 : index
    %c0_49 = arith.constant 0 : index
    %126 = vector.load %arg3[%c0_47, %c0_48, %c0_49] : memref<3x4x4xf32, #tpu.memory_space<vmem>>, vector<1x4x4xf32>
    %127 = vector.shape_cast %126 : vector<1x4x4xf32> to vector<4x4xf32>
    %cst_50 = arith.constant dense<0.000000e+00> : vector<4x32xf32>
    %128 = tpu.matmul %127, %117, %cst_50 {dimension_numbers = #tpu.dot_dimension_numbers<[1], [0], [0], [1], [0, 0, 1, 1], [], []>} : vector<4x4xf32>, vector<4x32xf32>, vector<4x32xf32> -> vector<4x32xf32>
    %c1_51 = arith.constant 1 : index
    %c0_52 = arith.constant 0 : index
    %c0_53 = arith.constant 0 : index
    %129 = vector.load %arg3[%c1_51, %c0_52, %c0_53] : memref<3x4x4xf32, #tpu.memory_space<vmem>>, vector<1x4x4xf32>
    %130 = vector.shape_cast %129 : vector<1x4x4xf32> to vector<4x4xf32>
    %cst_54 = arith.constant dense<0.000000e+00> : vector<4x32xf32>
    %131 = tpu.matmul %130, %91, %cst_54 {dimension_numbers = #tpu.dot_dimension_numbers<[1], [0], [0], [1], [0, 0, 1, 1], [], []>} : vector<4x4xf32>, vector<4x32xf32>, vector<4x32xf32> -> vector<4x32xf32>
    %132 = arith.addf %128, %131 : vector<4x32xf32>
    %c2_55 = arith.constant 2 : index
    %c0_56 = arith.constant 0 : index
    %c0_57 = arith.constant 0 : index
    %133 = vector.load %arg3[%c2_55, %c0_56, %c0_57] : memref<3x4x4xf32, #tpu.memory_space<vmem>>, vector<1x4x4xf32>
    %134 = vector.shape_cast %133 : vector<1x4x4xf32> to vector<4x4xf32>
    %cst_58 = arith.constant dense<0.000000e+00> : vector<4x32xf32>
    %135 = tpu.matmul %134, %125, %cst_58 {dimension_numbers = #tpu.dot_dimension_numbers<[1], [0], [0], [1], [0, 0, 1, 1], [], []>} : vector<4x4xf32>, vector<4x32xf32>, vector<4x32xf32> -> vector<4x32xf32>
    %136 = arith.addf %132, %135 : vector<4x32xf32>
    %cst_59 = arith.constant dense<0.000000e+00> : vector<4xf32>
    %137 = vector.multi_reduction <add>, %136, %cst_59 [1] : vector<4x32xf32> to vector<4xf32>
    %138 = vector.shape_cast %137 : vector<4xf32> to vector<4x1xf32>
    %cst_60 = arith.constant 3.125000e-02 : f32
    %139 = vector.broadcast %cst_60 : f32 to vector<4x1xf32>
    %140 = arith.mulf %138, %139 : vector<4x1xf32>
    %141 = vector.broadcast %140 : vector<4x1xf32> to vector<4x32xf32>
    %142 = arith.subf %136, %141 : vector<4x32xf32>
    %143 = arith.mulf %142, %142 : vector<4x32xf32>
    %cst_61 = arith.constant dense<0.000000e+00> : vector<4xf32>
    %144 = vector.multi_reduction <add>, %143, %cst_61 [1] : vector<4x32xf32> to vector<4xf32>
    %145 = vector.shape_cast %144 : vector<4xf32> to vector<4x1xf32>
    %146 = tpu.concatenate %138, %145 in 1 : vector<4x1xf32>, vector<4x1xf32> -> vector<4x2xf32>
    %c0_62 = arith.constant 0 : index
    %c0_63 = arith.constant 0 : index
    %c0_64 = arith.constant 0 : index
    %147 = vector.load %arg6[%c0_62, %c0_63, %c0_64] : memref<1x4x2xf32, #tpu.memory_space<vmem>>, vector<1x4x2xf32>
    %148 = vector.shape_cast %147 : vector<1x4x2xf32> to vector<4x2xf32>
    %149 = vector.shape_cast %146 : vector<4x2xf32> to vector<1x4x2xf32>
    tpu.vector_store %arg6[%c0_62, %c0_63, %c0_64], %149 {strides = array<i32>} : memref<1x4x2xf32, #tpu.memory_space<vmem>>, vector<1x4x2xf32>,
    return
  }
  func.func @transform_0(%arg0: i32) -> (i32, i32) {
    %c0_i32 = arith.constant 0 : i32
    %c0_i32_0 = arith.constant 0 : i32
    return %c0_i32, %arg0 : i32, i32
  }
  func.func @transform_1(%arg0: i32) -> (i32, i32, i32) {
    %c0_i32 = arith.constant 0 : i32
    %c0_i32_0 = arith.constant 0 : i32
    %c0_i32_1 = arith.constant 0 : i32
    %c0_i32_2 = arith.constant 0 : i32
    return %c0_i32, %c0_i32_0, %c0_i32_1 : i32, i32, i32
  }
  func.func @transform_2(%arg0: i32) -> (i32, i32, i32) {
    %c0_i32 = arith.constant 0 : i32
    %c0_i32_0 = arith.constant 0 : i32
    %c0_i32_1 = arith.constant 0 : i32
    %c0_i32_2 = arith.constant 0 : i32
    return %c0_i32, %c0_i32_0, %c0_i32_1 : i32, i32, i32
  }
  func.func @transform_3(%arg0: i32) -> (i32, i32) {
    %c0_i32 = arith.constant 0 : i32
    %c0_i32_0 = arith.constant 0 : i32
    %c0_i32_1 = arith.constant 0 : i32
    return %c0_i32, %c0_i32_0 : i32, i32
  }
  func.func @transform_4(%arg0: i32) -> (i32, i32) {
    %c0_i32 = arith.constant 0 : i32
    %c0_i32_0 = arith.constant 0 : i32
    %c0_i32_1 = arith.constant 0 : i32
    return %c0_i32, %c0_i32_0 : i32, i32
  }
  func.func @transform_5(%arg0: i32) -> (i32, i32, i32) {
    %c0_i32 = arith.constant 0 : i32
    %c0_i32_0 = arith.constant 0 : i32
    %c0_i32_1 = arith.constant 0 : i32
    return %arg0, %c0_i32, %c0_i32_0 : i32, i32, i32
  }
}

module attributes {stable_mosaic.version = 11 : i64} {
  func.func @out_kernel(%arg0: i32, %arg1: memref<4x32xf32, #tpu.memory_space<vmem>>, %arg2: memref<3x4x4xf32, #tpu.memory_space<vmem>>, %arg3: memref<3x4x4xf32, #tpu.memory_space<vmem>>, %arg4: memref<4x1xf32, #tpu.memory_space<vmem>>, %arg5: memref<4x1xf32, #tpu.memory_space<vmem>>, %arg6: memref<4x1xf32, #tpu.memory_space<vmem>>, %arg7: memref<4x1xf32, #tpu.memory_space<vmem>>, %arg8: memref<4x32xf32, #tpu.memory_space<vmem>>) attributes {dimension_semantics = [#tpu.dimension_semantics<parallel>], iteration_bounds = array<i64: 1>, scalar_prefetch = 0 : i64, scratch_operands = 0 : i64, tpu.core_type = #tpu.core_type<tc>, window_params = [{transform_indices = @transform_0, window_bounds = array<i64: 4, 32>}, {pipeline_mode = #tpu.pipeline_mode<synchronous>, transform_indices = @transform_1, window_bounds = array<i64: 3, 4, 4>}, {pipeline_mode = #tpu.pipeline_mode<synchronous>, transform_indices = @transform_2, window_bounds = array<i64: 3, 4, 4>}, {pipeline_mode = #tpu.pipeline_mode<synchronous>, transform_indices = @transform_3, window_bounds = array<i64: 4, 1>}, {pipeline_mode = #tpu.pipeline_mode<synchronous>, transform_indices = @transform_4, window_bounds = array<i64: 4, 1>}, {pipeline_mode = #tpu.pipeline_mode<synchronous>, transform_indices = @transform_5, window_bounds = array<i64: 4, 1>}, {pipeline_mode = #tpu.pipeline_mode<synchronous>, transform_indices = @transform_6, window_bounds = array<i64: 4, 1>}, {transform_indices = @transform_7, window_bounds = array<i64: 4, 32>}]} {
    %c0 = arith.constant 0 : index
    %c0_0 = arith.constant 0 : index
    %0 = vector.load %arg1[%c0, %c0_0] : memref<4x32xf32, #tpu.memory_space<vmem>>, vector<4x32xf32>
    %1 = tpu.iota {dimensions = array<i32: 1>} : vector<1x32xi32>
    %c16_i32 = arith.constant 16 : i32
    %c0_i32 = arith.constant 0 : i32
    %2 = arith.cmpi eq, %c16_i32, %c0_i32 : i32
    %c1_i32 = arith.constant 1 : i32
    %3 = arith.select %2, %c1_i32, %c16_i32 : i32
    %4 = vector.broadcast %3 : i32 to vector<1x32xi32>
    %5 = arith.remsi %1, %4 : vector<1x32xi32>
    %c0_i32_1 = arith.constant 0 : i32
    %6 = vector.broadcast %c0_i32_1 : i32 to vector<1x32xi32>
    %7 = arith.cmpi ne, %5, %6 : vector<1x32xi32>
    %c0_i32_2 = arith.constant 0 : i32
    %8 = vector.broadcast %c0_i32_2 : i32 to vector<1x32xi32>
    %9 = arith.cmpi slt, %5, %8 : vector<1x32xi32>
    %c0_i32_3 = arith.constant 0 : i32
    %10 = arith.cmpi slt, %3, %c0_i32_3 : i32
    %11 = vector.broadcast %10 : i1 to vector<1x32xi1>
    %12 = vector.broadcast %11 : vector<1x32xi1> to vector<1x32xi1>
    %13 = arith.xori %9, %12 : vector<1x32xi1>
    %14 = arith.andi %13, %7 : vector<1x32xi1>
    %15 = vector.broadcast %3 : i32 to vector<1x32xi32>
    %16 = arith.addi %5, %15 : vector<1x32xi32>
    %17 = arith.select %14, %16, %5 : vector<1x32xi1>, vector<1x32xi32>
    %cst = arith.constant 0.000000e+00 : f32
    %18 = vector.broadcast %cst : f32 to vector<4x1xf32>
    %c0_i32_4 = arith.constant 0 : i32
    %19 = vector.broadcast %c0_i32_4 : i32 to vector<1x32xi32>
    %20 = arith.cmpi eq, %17, %19 : vector<1x32xi32>
    %21 = vector.extract_strided_slice %0 {offsets = [0, 0], sizes = [4, 31], strides = [1, 1]} : vector<4x32xf32> to vector<4x31xf32>
    %22 = tpu.concatenate %18, %21 in 1 : vector<4x1xf32>, vector<4x31xf32> -> vector<4x32xf32>
    %cst_5 = arith.constant 0.000000e+00 : f32
    %23 = vector.shape_cast %20 : vector<1x32xi1> to vector<1x32xi1>
    %24 = vector.broadcast %23 : vector<1x32xi1> to vector<4x32xi1>
    %25 = vector.broadcast %cst_5 : f32 to vector<4x32xf32>
    %26 = arith.select %24, %25, %22 : vector<4x32xi1>, vector<4x32xf32>
    %c15_i32 = arith.constant 15 : i32
    %27 = vector.broadcast %c15_i32 : i32 to vector<1x32xi32>
    %28 = arith.cmpi eq, %17, %27 : vector<1x32xi32>
    %29 = vector.extract_strided_slice %0 {offsets = [0, 1], sizes = [4, 31], strides = [1, 1]} : vector<4x32xf32> to vector<4x31xf32>
    %30 = tpu.concatenate %29, %18 in 1 : vector<4x31xf32>, vector<4x1xf32> -> vector<4x32xf32>
    %cst_6 = arith.constant 0.000000e+00 : f32
    %31 = vector.shape_cast %28 : vector<1x32xi1> to vector<1x32xi1>
    %32 = vector.broadcast %31 : vector<1x32xi1> to vector<4x32xi1>
    %33 = vector.broadcast %cst_6 : f32 to vector<4x32xf32>
    %34 = arith.select %32, %33, %30 : vector<4x32xi1>, vector<4x32xf32>
    %c0_7 = arith.constant 0 : index
    %c0_8 = arith.constant 0 : index
    %c0_9 = arith.constant 0 : index
    %35 = vector.load %arg2[%c0_7, %c0_8, %c0_9] : memref<3x4x4xf32, #tpu.memory_space<vmem>>, vector<1x4x4xf32>
    %36 = vector.shape_cast %35 : vector<1x4x4xf32> to vector<4x4xf32>
    %cst_10 = arith.constant dense<0.000000e+00> : vector<4x32xf32>
    %37 = tpu.matmul %36, %26, %cst_10 {dimension_numbers = #tpu.dot_dimension_numbers<[1], [0], [0], [1], [0, 0, 1, 1], [], []>} : vector<4x4xf32>, vector<4x32xf32>, vector<4x32xf32> -> vector<4x32xf32>
    %c1 = arith.constant 1 : index
    %c0_11 = arith.constant 0 : index
    %c0_12 = arith.constant 0 : index
    %38 = vector.load %arg2[%c1, %c0_11, %c0_12] : memref<3x4x4xf32, #tpu.memory_space<vmem>>, vector<1x4x4xf32>
    %39 = vector.shape_cast %38 : vector<1x4x4xf32> to vector<4x4xf32>
    %cst_13 = arith.constant dense<0.000000e+00> : vector<4x32xf32>
    %40 = tpu.matmul %39, %0, %cst_13 {dimension_numbers = #tpu.dot_dimension_numbers<[1], [0], [0], [1], [0, 0, 1, 1], [], []>} : vector<4x4xf32>, vector<4x32xf32>, vector<4x32xf32> -> vector<4x32xf32>
    %41 = arith.addf %37, %40 : vector<4x32xf32>
    %c2 = arith.constant 2 : index
    %c0_14 = arith.constant 0 : index
    %c0_15 = arith.constant 0 : index
    %42 = vector.load %arg2[%c2, %c0_14, %c0_15] : memref<3x4x4xf32, #tpu.memory_space<vmem>>, vector<1x4x4xf32>
    %43 = vector.shape_cast %42 : vector<1x4x4xf32> to vector<4x4xf32>
    %cst_16 = arith.constant dense<0.000000e+00> : vector<4x32xf32>
    %44 = tpu.matmul %43, %34, %cst_16 {dimension_numbers = #tpu.dot_dimension_numbers<[1], [0], [0], [1], [0, 0, 1, 1], [], []>} : vector<4x4xf32>, vector<4x32xf32>, vector<4x32xf32> -> vector<4x32xf32>
    %45 = arith.addf %41, %44 : vector<4x32xf32>
    %c0_17 = arith.constant 0 : index
    %c0_18 = arith.constant 0 : index
    %46 = vector.load %arg4[%c0_17, %c0_18] : memref<4x1xf32, #tpu.memory_space<vmem>>, vector<4x1xf32>
    %47 = vector.broadcast %46 : vector<4x1xf32> to vector<4x32xf32>
    %48 = arith.mulf %45, %47 : vector<4x32xf32>
    %c0_19 = arith.constant 0 : index
    %c0_20 = arith.constant 0 : index
    %49 = vector.load %arg5[%c0_19, %c0_20] : memref<4x1xf32, #tpu.memory_space<vmem>>, vector<4x1xf32>
    %50 = vector.broadcast %49 : vector<4x1xf32> to vector<4x32xf32>
    %51 = arith.addf %48, %50 : vector<4x32xf32>
    %cst_21 = arith.constant 5.000000e-01 : f32
    %52 = vector.broadcast %cst_21 : f32 to vector<4x32xf32>
    %53 = arith.mulf %52, %51 : vector<4x32xf32>
    %cst_22 = arith.constant 0.707106769 : f32
    %54 = vector.broadcast %cst_22 : f32 to vector<4x32xf32>
    %55 = arith.mulf %51, %54 : vector<4x32xf32>
    %56 = math.absf %55 : vector<4x32xf32>
    %cst_23 = arith.constant 0.327591091 : f32
    %57 = vector.broadcast %cst_23 : f32 to vector<4x32xf32>
    %58 = arith.mulf %57, %56 : vector<4x32xf32>
    %cst_24 = arith.constant 1.000000e+00 : f32
    %59 = vector.broadcast %cst_24 : f32 to vector<4x32xf32>
    %60 = arith.addf %59, %58 : vector<4x32xf32>
    %cst_25 = arith.constant 1.000000e+00 : f32
    %61 = vector.broadcast %cst_25 : f32 to vector<4x32xf32>
    %62 = arith.divf %61, %60 : vector<4x32xf32>
    %cst_26 = arith.constant 1.06140542 : f32
    %63 = vector.broadcast %cst_26 : f32 to vector<4x32xf32>
    %64 = arith.mulf %63, %62 : vector<4x32xf32>
    %cst_27 = arith.constant -1.45315206 : f32
    %65 = vector.broadcast %cst_27 : f32 to vector<4x32xf32>
    %66 = arith.addf %64, %65 : vector<4x32xf32>
    %67 = arith.mulf %66, %62 : vector<4x32xf32>
    %cst_28 = arith.constant 1.42141378 : f32
    %68 = vector.broadcast %cst_28 : f32 to vector<4x32xf32>
    %69 = arith.addf %67, %68 : vector<4x32xf32>
    %70 = arith.mulf %69, %62 : vector<4x32xf32>
    %cst_29 = arith.constant -0.284496725 : f32
    %71 = vector.broadcast %cst_29 : f32 to vector<4x32xf32>
    %72 = arith.addf %70, %71 : vector<4x32xf32>
    %73 = arith.mulf %72, %62 : vector<4x32xf32>
    %cst_30 = arith.constant 0.254829586 : f32
    %74 = vector.broadcast %cst_30 : f32 to vector<4x32xf32>
    %75 = arith.addf %73, %74 : vector<4x32xf32>
    %76 = arith.mulf %75, %62 : vector<4x32xf32>
    %77 = arith.mulf %56, %56 : vector<4x32xf32>
    %cst_31 = arith.constant 0.000000e+00 : f32
    %78 = vector.broadcast %cst_31 : f32 to vector<4x32xf32>
    %79 = arith.subf %78, %77 : vector<4x32xf32>
    %80 = math.exp %79 : vector<4x32xf32>
    %81 = arith.mulf %76, %80 : vector<4x32xf32>
    %cst_32 = arith.constant 1.000000e+00 : f32
    %82 = vector.broadcast %cst_32 : f32 to vector<4x32xf32>
    %83 = arith.subf %82, %81 : vector<4x32xf32>
    %cst_33 = arith.constant 0.000000e+00 : f32
    %84 = vector.broadcast %cst_33 : f32 to vector<4x32xf32>
    %85 = arith.cmpf olt, %55, %84 : vector<4x32xf32>
    %cst_34 = arith.constant 0.000000e+00 : f32
    %86 = vector.broadcast %cst_34 : f32 to vector<4x32xf32>
    %87 = arith.subf %86, %83 : vector<4x32xf32>
    %88 = arith.select %85, %87, %83 : vector<4x32xi1>, vector<4x32xf32>
    %cst_35 = arith.constant 1.000000e+00 : f32
    %89 = vector.broadcast %cst_35 : f32 to vector<4x32xf32>
    %90 = arith.addf %89, %88 : vector<4x32xf32>
    %91 = arith.mulf %53, %90 : vector<4x32xf32>
    %92 = tpu.iota {dimensions = array<i32: 1>} : vector<1x32xi32>
    %c16_i32_36 = arith.constant 16 : i32
    %c0_i32_37 = arith.constant 0 : i32
    %93 = arith.cmpi eq, %c16_i32_36, %c0_i32_37 : i32
    %c1_i32_38 = arith.constant 1 : i32
    %94 = arith.select %93, %c1_i32_38, %c16_i32_36 : i32
    %95 = vector.broadcast %94 : i32 to vector<1x32xi32>
    %96 = arith.remsi %92, %95 : vector<1x32xi32>
    %c0_i32_39 = arith.constant 0 : i32
    %97 = vector.broadcast %c0_i32_39 : i32 to vector<1x32xi32>
    %98 = arith.cmpi ne, %96, %97 : vector<1x32xi32>
    %c0_i32_40 = arith.constant 0 : i32
    %99 = vector.broadcast %c0_i32_40 : i32 to vector<1x32xi32>
    %100 = arith.cmpi slt, %96, %99 : vector<1x32xi32>
    %c0_i32_41 = arith.constant 0 : i32
    %101 = arith.cmpi slt, %94, %c0_i32_41 : i32
    %102 = vector.broadcast %101 : i1 to vector<1x32xi1>
    %103 = vector.broadcast %102 : vector<1x32xi1> to vector<1x32xi1>
    %104 = arith.xori %100, %103 : vector<1x32xi1>
    %105 = arith.andi %104, %98 : vector<1x32xi1>
    %106 = vector.broadcast %94 : i32 to vector<1x32xi32>
    %107 = arith.addi %96, %106 : vector<1x32xi32>
    %108 = arith.select %105, %107, %96 : vector<1x32xi1>, vector<1x32xi32>
    %cst_42 = arith.constant 0.000000e+00 : f32
    %109 = vector.broadcast %cst_42 : f32 to vector<4x1xf32>
    %c0_i32_43 = arith.constant 0 : i32
    %110 = vector.broadcast %c0_i32_43 : i32 to vector<1x32xi32>
    %111 = arith.cmpi eq, %108, %110 : vector<1x32xi32>
    %112 = vector.extract_strided_slice %91 {offsets = [0, 0], sizes = [4, 31], strides = [1, 1]} : vector<4x32xf32> to vector<4x31xf32>
    %113 = tpu.concatenate %109, %112 in 1 : vector<4x1xf32>, vector<4x31xf32> -> vector<4x32xf32>
    %cst_44 = arith.constant 0.000000e+00 : f32
    %114 = vector.shape_cast %111 : vector<1x32xi1> to vector<1x32xi1>
    %115 = vector.broadcast %114 : vector<1x32xi1> to vector<4x32xi1>
    %116 = vector.broadcast %cst_44 : f32 to vector<4x32xf32>
    %117 = arith.select %115, %116, %113 : vector<4x32xi1>, vector<4x32xf32>
    %c15_i32_45 = arith.constant 15 : i32
    %118 = vector.broadcast %c15_i32_45 : i32 to vector<1x32xi32>
    %119 = arith.cmpi eq, %108, %118 : vector<1x32xi32>
    %120 = vector.extract_strided_slice %91 {offsets = [0, 1], sizes = [4, 31], strides = [1, 1]} : vector<4x32xf32> to vector<4x31xf32>
    %121 = tpu.concatenate %120, %109 in 1 : vector<4x31xf32>, vector<4x1xf32> -> vector<4x32xf32>
    %cst_46 = arith.constant 0.000000e+00 : f32
    %122 = vector.shape_cast %119 : vector<1x32xi1> to vector<1x32xi1>
    %123 = vector.broadcast %122 : vector<1x32xi1> to vector<4x32xi1>
    %124 = vector.broadcast %cst_46 : f32 to vector<4x32xf32>
    %125 = arith.select %123, %124, %121 : vector<4x32xi1>, vector<4x32xf32>
    %c0_47 = arith.constant 0 : index
    %c0_48 = arith.constant 0 : index
    %c0_49 = arith.constant 0 : index
    %126 = vector.load %arg3[%c0_47, %c0_48, %c0_49] : memref<3x4x4xf32, #tpu.memory_space<vmem>>, vector<1x4x4xf32>
    %127 = vector.shape_cast %126 : vector<1x4x4xf32> to vector<4x4xf32>
    %cst_50 = arith.constant dense<0.000000e+00> : vector<4x32xf32>
    %128 = tpu.matmul %127, %117, %cst_50 {dimension_numbers = #tpu.dot_dimension_numbers<[1], [0], [0], [1], [0, 0, 1, 1], [], []>} : vector<4x4xf32>, vector<4x32xf32>, vector<4x32xf32> -> vector<4x32xf32>
    %c1_51 = arith.constant 1 : index
    %c0_52 = arith.constant 0 : index
    %c0_53 = arith.constant 0 : index
    %129 = vector.load %arg3[%c1_51, %c0_52, %c0_53] : memref<3x4x4xf32, #tpu.memory_space<vmem>>, vector<1x4x4xf32>
    %130 = vector.shape_cast %129 : vector<1x4x4xf32> to vector<4x4xf32>
    %cst_54 = arith.constant dense<0.000000e+00> : vector<4x32xf32>
    %131 = tpu.matmul %130, %91, %cst_54 {dimension_numbers = #tpu.dot_dimension_numbers<[1], [0], [0], [1], [0, 0, 1, 1], [], []>} : vector<4x4xf32>, vector<4x32xf32>, vector<4x32xf32> -> vector<4x32xf32>
    %132 = arith.addf %128, %131 : vector<4x32xf32>
    %c2_55 = arith.constant 2 : index
    %c0_56 = arith.constant 0 : index
    %c0_57 = arith.constant 0 : index
    %133 = vector.load %arg3[%c2_55, %c0_56, %c0_57] : memref<3x4x4xf32, #tpu.memory_space<vmem>>, vector<1x4x4xf32>
    %134 = vector.shape_cast %133 : vector<1x4x4xf32> to vector<4x4xf32>
    %cst_58 = arith.constant dense<0.000000e+00> : vector<4x32xf32>
    %135 = tpu.matmul %134, %125, %cst_58 {dimension_numbers = #tpu.dot_dimension_numbers<[1], [0], [0], [1], [0, 0, 1, 1], [], []>} : vector<4x4xf32>, vector<4x32xf32>, vector<4x32xf32> -> vector<4x32xf32>
    %136 = arith.addf %132, %135 : vector<4x32xf32>
    %c0_59 = arith.constant 0 : index
    %c0_60 = arith.constant 0 : index
    %137 = vector.load %arg6[%c0_59, %c0_60] : memref<4x1xf32, #tpu.memory_space<vmem>>, vector<4x1xf32>
    %138 = vector.broadcast %137 : vector<4x1xf32> to vector<4x32xf32>
    %139 = arith.mulf %136, %138 : vector<4x32xf32>
    %c0_61 = arith.constant 0 : index
    %c0_62 = arith.constant 0 : index
    %140 = vector.load %arg7[%c0_61, %c0_62] : memref<4x1xf32, #tpu.memory_space<vmem>>, vector<4x1xf32>
    %141 = vector.broadcast %140 : vector<4x1xf32> to vector<4x32xf32>
    %142 = arith.addf %139, %141 : vector<4x32xf32>
    %143 = arith.addf %142, %0 : vector<4x32xf32>
    %cst_63 = arith.constant 5.000000e-01 : f32
    %144 = vector.broadcast %cst_63 : f32 to vector<4x32xf32>
    %145 = arith.mulf %144, %143 : vector<4x32xf32>
    %cst_64 = arith.constant 0.707106769 : f32
    %146 = vector.broadcast %cst_64 : f32 to vector<4x32xf32>
    %147 = arith.mulf %143, %146 : vector<4x32xf32>
    %148 = math.absf %147 : vector<4x32xf32>
    %cst_65 = arith.constant 0.327591091 : f32
    %149 = vector.broadcast %cst_65 : f32 to vector<4x32xf32>
    %150 = arith.mulf %149, %148 : vector<4x32xf32>
    %cst_66 = arith.constant 1.000000e+00 : f32
    %151 = vector.broadcast %cst_66 : f32 to vector<4x32xf32>
    %152 = arith.addf %151, %150 : vector<4x32xf32>
    %cst_67 = arith.constant 1.000000e+00 : f32
    %153 = vector.broadcast %cst_67 : f32 to vector<4x32xf32>
    %154 = arith.divf %153, %152 : vector<4x32xf32>
    %cst_68 = arith.constant 1.06140542 : f32
    %155 = vector.broadcast %cst_68 : f32 to vector<4x32xf32>
    %156 = arith.mulf %155, %154 : vector<4x32xf32>
    %cst_69 = arith.constant -1.45315206 : f32
    %157 = vector.broadcast %cst_69 : f32 to vector<4x32xf32>
    %158 = arith.addf %156, %157 : vector<4x32xf32>
    %159 = arith.mulf %158, %154 : vector<4x32xf32>
    %cst_70 = arith.constant 1.42141378 : f32
    %160 = vector.broadcast %cst_70 : f32 to vector<4x32xf32>
    %161 = arith.addf %159, %160 : vector<4x32xf32>
    %162 = arith.mulf %161, %154 : vector<4x32xf32>
    %cst_71 = arith.constant -0.284496725 : f32
    %163 = vector.broadcast %cst_71 : f32 to vector<4x32xf32>
    %164 = arith.addf %162, %163 : vector<4x32xf32>
    %165 = arith.mulf %164, %154 : vector<4x32xf32>
    %cst_72 = arith.constant 0.254829586 : f32
    %166 = vector.broadcast %cst_72 : f32 to vector<4x32xf32>
    %167 = arith.addf %165, %166 : vector<4x32xf32>
    %168 = arith.mulf %167, %154 : vector<4x32xf32>
    %169 = arith.mulf %148, %148 : vector<4x32xf32>
    %cst_73 = arith.constant 0.000000e+00 : f32
    %170 = vector.broadcast %cst_73 : f32 to vector<4x32xf32>
    %171 = arith.subf %170, %169 : vector<4x32xf32>
    %172 = math.exp %171 : vector<4x32xf32>
    %173 = arith.mulf %168, %172 : vector<4x32xf32>
    %cst_74 = arith.constant 1.000000e+00 : f32
    %174 = vector.broadcast %cst_74 : f32 to vector<4x32xf32>
    %175 = arith.subf %174, %173 : vector<4x32xf32>
    %cst_75 = arith.constant 0.000000e+00 : f32
    %176 = vector.broadcast %cst_75 : f32 to vector<4x32xf32>
    %177 = arith.cmpf olt, %147, %176 : vector<4x32xf32>
    %cst_76 = arith.constant 0.000000e+00 : f32
    %178 = vector.broadcast %cst_76 : f32 to vector<4x32xf32>
    %179 = arith.subf %178, %175 : vector<4x32xf32>
    %180 = arith.select %177, %179, %175 : vector<4x32xi1>, vector<4x32xf32>
    %cst_77 = arith.constant 1.000000e+00 : f32
    %181 = vector.broadcast %cst_77 : f32 to vector<4x32xf32>
    %182 = arith.addf %181, %180 : vector<4x32xf32>
    %183 = arith.mulf %145, %182 : vector<4x32xf32>
    %c0_78 = arith.constant 0 : index
    %c0_79 = arith.constant 0 : index
    %184 = vector.load %arg8[%c0_78, %c0_79] : memref<4x32xf32, #tpu.memory_space<vmem>>, vector<4x32xf32>
    tpu.vector_store %arg8[%c0_78, %c0_79], %183 {strides = array<i32>} : memref<4x32xf32, #tpu.memory_space<vmem>>, vector<4x32xf32>,
    return
  }
  func.func @transform_0(%arg0: i32) -> (i32, i32) {
    %c0_i32 = arith.constant 0 : i32
    %c0_i32_0 = arith.constant 0 : i32
    return %c0_i32, %arg0 : i32, i32
  }
  func.func @transform_1(%arg0: i32) -> (i32, i32, i32) {
    %c0_i32 = arith.constant 0 : i32
    %c0_i32_0 = arith.constant 0 : i32
    %c0_i32_1 = arith.constant 0 : i32
    %c0_i32_2 = arith.constant 0 : i32
    return %c0_i32, %c0_i32_0, %c0_i32_1 : i32, i32, i32
  }
  func.func @transform_2(%arg0: i32) -> (i32, i32, i32) {
    %c0_i32 = arith.constant 0 : i32
    %c0_i32_0 = arith.constant 0 : i32
    %c0_i32_1 = arith.constant 0 : i32
    %c0_i32_2 = arith.constant 0 : i32
    return %c0_i32, %c0_i32_0, %c0_i32_1 : i32, i32, i32
  }
  func.func @transform_3(%arg0: i32) -> (i32, i32) {
    %c0_i32 = arith.constant 0 : i32
    %c0_i32_0 = arith.constant 0 : i32
    %c0_i32_1 = arith.constant 0 : i32
    return %c0_i32, %c0_i32_0 : i32, i32
  }
  func.func @transform_4(%arg0: i32) -> (i32, i32) {
    %c0_i32 = arith.constant 0 : i32
    %c0_i32_0 = arith.constant 0 : i32
    %c0_i32_1 = arith.constant 0 : i32
    return %c0_i32, %c0_i32_0 : i32, i32
  }
  func.func @transform_5(%arg0: i32) -> (i32, i32) {
    %c0_i32 = arith.constant 0 : i32
    %c0_i32_0 = arith.constant 0 : i32
    %c0_i32_1 = arith.constant 0 : i32
    return %c0_i32, %c0_i32_0 : i32, i32
  }
  func.func @transform_6(%arg0: i32) -> (i32, i32) {
    %c0_i32 = arith.constant 0 : i32
    %c0_i32_0 = arith.constant 0 : i32
    %c0_i32_1 = arith.constant 0 : i32
    return %c0_i32, %c0_i32_0 : i32, i32
  }
  func.func @transform_7(%arg0: i32) -> (i32, i32) {
    %c0_i32 = arith.constant 0 : i32
    %c0_i32_0 = arith.constant 0 : i32
    return %c0_i32, %arg0 : i32, i32
  }
}

</mosaic_0001>

<bundles_post_ra>
// kernel: resblock_forward.3
= control target key start
LH: loop header
LB: loop body
LE: loop exit
PB: predicated region body
PF: predicated region fallthrough
CT: control target
= control target key end

     0   :  { %s157_s11 = smov 127   ;;  %s158_s12 = smov 1   ;;  %vm52_vm0 = vcmask 1043456   ;;  %vm48_vm1 = vcmask 31744   ;;  %v12_v2 = vlaneseq  ;;  %vm40_vm2 = vcmask 252928   ;;  %s197_s0 = inlined_call_operand.vmem [shape: f32[4,32], index: 0, kind: input, shape index: {}]   ;;  %s198_s1 = inlined_call_operand.vmem [shape: f32[3,4,4], index: 1, kind: input, shape index: {}]   ;;  %s199_s2 = inlined_call_operand.vmem [shape: f32[1,4,2], index: 2, kind: output, shape index: {}]  }
   0x1   :  { %v11_v0 = vld [vmem:[%s197_s0] sm:$0xf]  ;;  %v147_v1 = vld [vmem:[%s198_s1 + $0x4] sm:$0xf]  ;;  %v152_v7 = vld [vmem:[%s198_s1 + $0x8] sm:$0xf] }
   0x2   :  { %37 = vrot.lane.b32.xlu0 %v11_v0, %s157_s11  ;;  %148 = vmatpush.msk.msra.mxu0 %vm52_vm0, %v11_v0  ;;  %v13_v3 = vand.u32 127, %v12_v2  ;;  %vm31_vm4 = vcmask 7168   ;;  %v45_v11 = vld [vmem:[%s198_s1] sm:$0xf]  ;;  %vm130_vm6 = vcmask 257024   ;;  %vm141_vm7 = vcmask 11264  }
   0x3   :  { %149 = vmatmul.msk.f32.vlgmr.msra.gmra.mxu0 %vm48_vm1, %v147_v1 }
   0x4   :  { %v18_v4 = vand.u32 15, %v13_v3 }
   0x6   :  { %vm36_vm3 = vcmp.eq.s32.totalorder %v18_v4, 15  ;;  %vm26_vm5 = vcmp.eq.s32.totalorder %v18_v4, 0 }
   0xa   :  { %28 = vrot.lane.b32.xlu0 %v11_v0, %s158_s12 }
  0x74   :  { %v38_v5 = vpop.permute.xlu0 %37 }
  0x75   :  { %v41_v6 = vsel %vm40_vm2, %v38_v5, 0.0 }
  0x76   :  { %v44_v8 = vsel %vm36_vm3, 0.0, %v41_v6 }
  0x77   :  { %153 = vmatpush.msk.msra.mxu2 %vm52_vm0, %v44_v8 }
  0x78   :  { %154 = vmatmul.msk.f32.vlgmr.msra.gmra.mxu2 %vm48_vm1, %v152_v7 }
  0x7c   :  { %v29_v9 = vpop.permute.xlu0 %28 }
  0x7d   :  { %v32_v10 = vsel %vm31_vm4, 0.0, %v29_v9 }
  0x7e   :  { %v35_v12 = vsel %vm26_vm5, 0.0, %v32_v10 }
  0x7f   :  { %150 = vmatpush.msk.msra.mxu1 %vm52_vm0, %v35_v12 }
  0x80   :  { %151 = vmatmul.msk.f32.vlgmr.msra.gmra.mxu1 %vm48_vm1, %v45_v11  ;;  %v72_v13 = vpop.f32.mrf.mxu0 }
  0xfb   :  { %v126_v15 = vpop.f32.mrf.mxu2 }
  0xfd   :  { %v98_v14 = vpop.f32.mrf.mxu1 }
  0xfe   :  { %v99_v16 = vadd.f32 %v98_v14, %v72_v13 }
 0x100   :  { %v129_v17 = vadd.f32 %v126_v15, %v99_v16 }
 0x102   :  { %v131_v18 = vsel %vm130_vm6, %v129_v17, 0.0 }
 0x103   :  { %132 = vadd.xlane.f32.xlu1 %v131_v18 }
 0x176   :  { %v133_v19 = vpop.xlane.xlu1 %132 }
 0x177   :  { %v134_v20 = vmul.f32 0.03125, %v133_v19 }
 0x179   :  { %v135_v21 = vsub.f32 %v129_v17, %v134_v20 }
 0x17b   :  { %v136_v22 = vmul.f32 %v135_v21, %v135_v21 }
 0x17d   :  { %v137_v23 = vsel %vm130_vm6, %v136_v22, 0.0 }
 0x17e   :  { %138 = vadd.xlane.f32.xlu1 %v137_v23 }
 0x1f1   :  { %v139_v24 = vpop.xlane.xlu1 %138 }
 0x1f2   :  { %v140_v25 = vsel %vm31_vm4, %v133_v19, %v139_v24 }
 0x1f3   :  { %142 = vst.msk [vmem:[%s199_s2] sm:$0xf] %vm141_vm7, %v140_v25 }

// kernel: resblock_forward.4
= control target key start
LH: loop header
LB: loop body
LE: loop exit
PB: predicated region body
PF: predicated region fallthrough
CT: control target
= control target key end

     0   :  { %s329_s20 = smov 127   ;;  %s330_s21 = smov 1   ;;  %vm61_vm0 = vcmask 1043456   ;;  %vm57_vm1 = vcmask 31744   ;;  %v331_v2 = vmov 0   ;;  %v21_v5 = vlaneseq  ;;  %s429_s0 = inlined_call_operand.vmem [shape: f32[4,32], index: 0, kind: input, shape index: {}]   ;;  %s430_s3 = inlined_call_operand.vmem [shape: f32[4,1], index: 3, kind: input, shape index: {}]   ;;  %s431_s1 = inlined_call_operand.vmem [shape: f32[3,4,4], index: 1, kind: input, shape index: {}]   ;;  %s432_s4 = inlined_call_operand.vmem [shape: f32[4,1], index: 4, kind: input, shape index: {}]   ;;  %s433_s2 = inlined_call_operand.vmem [shape: f32[3,4,4], index: 2, kind: input, shape index: {}]   ;;  %s434_s5 = inlined_call_operand.vmem [shape: f32[1,4,2], index: 5, kind: output, shape index: {}]  }
   0x1   :  { %v20_v0 = vld [vmem:[%s429_s0] sm:$0xf]  ;;  %v304_v1 = vld [vmem:[%s431_s1 + $0x4] sm:$0xf]  ;;  %323 = vset.pattern.permute.xlu1 %v331_v2  ;;  %324 = vset.pattern.permute.xlu0 %v331_v2  ;;  %vm49_vm2 = vcmask 252928   ;;  %vm40_vm4 = vcmask 7168  }
   0x2   :  { %46 = vrot.lane.b32.xlu0 %v20_v0, %s329_s20  ;;  %305 = vmatpush.msk.msra.mxu0 %vm61_vm0, %v20_v0  ;;  %v139_v3 = vld [vmem:[%s430_s3] sm:$0xf]  ;;  %v22_v6 = vand.u32 127, %v21_v5  ;;  %v309_v11 = vld [vmem:[%s431_s1 + $0x8] sm:$0xf]  ;;  %vm287_vm11 = vcmask 257024  }
   0x3   :  { %306 = vmatmul.msk.f32.vlgmr.msra.gmra.mxu0 %vm57_vm1, %v304_v1  ;;  %142 = vperm.xlu1 %323, %v139_v3   ;;  %v146_v4 = vld [vmem:[%s432_s4] sm:$0xf]  ;;  %v312_v61 = vld [vmem:[%s433_s2 + $0x4] sm:$0xf]  ;;  %vm298_vm12 = vcmask 11264  }
   0x4   :  { %v27_v7 = vand.u32 15, %v22_v6  ;;  %v54_v16 = vld [vmem:[%s431_s1] sm:$0xf] }
   0x6   :  { %vm378_vm3 = vcmp.eq.s32.totalorder %v27_v7, 15  ;;  %vm390_vm5 = vcmp.eq.s32.totalorder %v27_v7, 0 }
   0xa   :  { %37 = vrot.lane.b32.xlu0 %v20_v0, %s330_s21  ;;  %v204_v0 = vld [vmem:[%s433_s2] sm:$0xf] }
   0xb   :  { %149 = vperm.xlu1 %323, %v146_v4   ;;  %v317_v4 = vld [vmem:[%s433_s2 + $0x8] sm:$0xf] }
  0x74   :  { %v47_v9 = vpop.permute.xlu0 %46 }
  0x75   :  { %v50_v10 = vsel %vm49_vm2, %v47_v9, 0.0  ;;  %v143_v18 = vpop.permute.xlu1 %142 }
  0x76   :  { %v53_v12 = vsel %vm378_vm3, 0.0, %v50_v10 }
  0x77   :  { %310 = vmatpush.msk.msra.mxu2 %vm61_vm0, %v53_v12 }
  0x78   :  { %311 = vmatmul.msk.f32.vlgmr.msra.gmra.mxu2 %vm57_vm1, %v309_v11 }
  0x7c   :  { %v38_v14 = vpop.permute.xlu0 %37 }
  0x7d   :  { %v41_v15 = vsel %vm40_vm4, 0.0, %v38_v14  ;;  %v150_v25 = vpop.permute.xlu1 %149 }
  0x7e   :  { %v44_v17 = vsel %vm390_vm5, 0.0, %v41_v15 }
  0x7f   :  { %307 = vmatpush.msk.msra.mxu1 %vm61_vm0, %v44_v17 }
  0x80   :  { %308 = vmatmul.msk.f32.vlgmr.msra.gmra.mxu1 %vm57_vm1, %v54_v16  ;;  %v81_v19 = vpop.f32.mrf.mxu0 }
  0xfb   :  { %v135_v21 = vpop.f32.mrf.mxu2 }
  0xfd   :  { %v107_v20 = vpop.f32.mrf.mxu1 }
  0xfe   :  { %v108_v22 = vadd.f32 %v107_v20, %v81_v19 }
 0x100   :  { %v138_v23 = vadd.f32 %v135_v21, %v108_v22 }
 0x102   :  { %v145_v24 = vmul.f32 %v143_v18, %v138_v23 }
 0x104   :  { %v152_v26 = vadd.f32 %v150_v25, %v145_v24 }
 0x106   :  { %v154_v27 = vmul.f32 0.70710677, %v152_v26  ;;  %v153_v58 = vmul.f32 0.5, %v152_v26 }
 0x108   :  { %v155_v28 = vand.u32 2147483647, %v154_v27  ;;  %vm188_vm10 = vcmp.lt.f32.partialorder %v154_v27, 0.0 }
 0x10a   :  { %v156_v29 = vmul.f32 0.3275911, %v155_v28  ;;  %v182_v40 = vmul.f32 %v155_v28, %v155_v28 }
 0x10c   :  { %v157_v30 = vadd.f32 1.0, %v156_v29  ;;  %v183_v44 = vsub.f32 0.0, %v182_v40 }
 0x10e   :  { %325 = vrcp.f32 %v157_v30  ;;  %v169_v34 = vand.u32 2147483648, %v157_v30  ;;  %v167_v36 = vand.u32 2147483647, %v157_v30  ;;  %vm163_vm7 = vweird.f32 %v157_v30 }
 0x10f   :  { %v184_v47 = vmul.f32 1.442695, %v183_v44 }
 0x110   :  { %v170_v38 = vor.u32 1.1754944e-38, %v169_v34  ;;  %vm168_vm9 = vcmp.eq.f32.partialorder %v167_v36, 8.507059e+37 }
 0x111   :  { %327 = vpow2.f32 %v184_v47 }
 0x114   :  { %v326_v31 = vpop.eup %325 }
 0x115   :  { %v159_v32 = vmul.f32 %v326_v31, %v157_v30  ;;  %vm164_vm6 = vweird.f32 %v326_v31 }
 0x116   :  { %vm165_vm8 = vmor %vm163_vm7, %vm164_vm6 }
 0x117   :  { %v160_v33 = vsub.f32 1.0, %v159_v32  ;;  %v328_v53 = vpop.eup %327 }
 0x119   :  { %v161_v35 = vmul.f32 %v326_v31, %v160_v33 }
 0x11b   :  { %v162_v37 = vadd.f32 %v326_v31, %v161_v35 }
 0x11d   :  { %v166_v39 = vsel %vm165_vm8, %v326_v31, %v162_v37 }
 0x11e   :  { %v171_v41 = vsel %vm168_vm9, %v170_v38, %v166_v39 }
 0x11f   :  { %v173_v42 = vmul.f32 1.0614054, %v171_v41 }
 0x121   :  { %v174_v43 = vadd.f32 -1.4531521, %v173_v42 }
 0x123   :  { %v175_v45 = vmul.f32 %v174_v43, %v171_v41 }
 0x125   :  { %v176_v46 = vadd.f32 1.4214138, %v175_v45 }
 0x127   :  { %v177_v48 = vmul.f32 %v176_v46, %v171_v41 }
 0x129   :  { %v178_v49 = vadd.f32 -0.28449672, %v177_v48 }
 0x12b   :  { %v179_v50 = vmul.f32 %v178_v49, %v171_v41 }
 0x12d   :  { %v180_v51 = vadd.f32 0.2548296, %v179_v50 }
 0x12f   :  { %v181_v52 = vmul.f32 %v180_v51, %v171_v41 }
 0x131   :  { %v186_v54 = vmul.f32 %v328_v53, %v181_v52 }
 0x133   :  { %v187_v55 = vsub.f32 1.0, %v186_v54 }
 0x135   :  { %v189_v56 = vsub.f32 0.0, %v187_v55 }
 0x137   :  { %v190_v57 = vsel %vm188_vm10, %v189_v56, %v187_v55 }
 0x138   :  { %v191_v59 = vadd.f32 1.0, %v190_v57 }
 0x13a   :  { %v192_v60 = vmul.f32 %v191_v59, %v153_v58 }
 0x13c   :  { %194 = vrot.lane.b32.xlu2 %v192_v60, %s330_s21  ;;  %313 = vmatpush.msk.msra.mxu3 %vm61_vm0, %v192_v60 }
 0x13d   :  { %314 = vmatmul.msk.f32.vlgmr.msra.gmra.mxu3 %vm57_vm1, %v312_v61 }
 0x144   :  { %199 = vrot.lane.b32.xlu2 %v192_v60, %s329_s20 }
 0x196   :  { %v195_v62 = vpop.permute.xlu2 %194 }
 0x197   :  { %v197_v63 = vsel %vm40_vm4, 0.0, %v195_v62 }
 0x198   :  { %v198_v1 = vsel %vm390_vm5, 0.0, %v197_v63 }
 0x199   :  { %315 = vmatpush.msk.msrb.mxu0 %vm61_vm0, %v198_v1 }
 0x19a   :  { %316 = vmatmul.msk.f32.vlgmr.msrb.gmra.mxu0 %vm57_vm1, %v204_v0 }
 0x19e   :  { %v200_v2 = vpop.permute.xlu2 %199 }
 0x19f   :  { %v202_v3 = vsel %vm49_vm2, %v200_v2, 0.0 }
 0x1a0   :  { %v203_v5 = vsel %vm378_vm3, 0.0, %v202_v3 }
 0x1a1   :  { %318 = vmatpush.msk.msrb.mxu1 %vm61_vm0, %v203_v5 }
 0x1a2   :  { %319 = vmatmul.msk.f32.vlgmr.msrb.gmra.mxu1 %vm57_vm1, %v317_v4 }
 0x1c0   :  { %v229_v6 = vpop.f32.mrf.mxu3 }
 0x217   :  { %v255_v7 = vpop.f32.mrf.mxu0 }
 0x218   :  { %v256_v9 = vadd.f32 %v255_v7, %v229_v6 }
 0x21f   :  { %v283_v10 = vpop.f32.mrf.mxu1 }
 0x220   :  { %v286_v11 = vadd.f32 %v283_v10, %v256_v9 }
 0x222   :  { %v288_v12 = vsel %vm287_vm11, %v286_v11, 0.0 }
 0x223   :  { %289 = vadd.xlane.f32.xlu0 %v288_v12 }
 0x296   :  { %v290_v13 = vpop.xlane.xlu0 %289 }
 0x297   :  { %v291_v14 = vmul.f32 0.03125, %v290_v13 }
 0x299   :  { %v292_v15 = vsub.f32 %v286_v11, %v291_v14 }
 0x29b   :  { %v293_v16 = vmul.f32 %v292_v15, %v292_v15 }
 0x29d   :  { %v294_v17 = vsel %vm287_vm11, %v293_v16, 0.0 }
 0x29e   :  { %295 = vadd.xlane.f32.xlu1 %v294_v17 }
 0x311   :  { %v296_v8 = vpop.xlane.xlu1 %295 }
 0x312   :  { %v297_v18 = vsel %vm40_vm4, %v290_v13, %v296_v8 }
 0x313   :  { %299 = vst.msk [vmem:[%s434_s5] sm:$0xf] %vm298_vm12, %v297_v18 }

// kernel: resblock_forward.5
= control target key start
LH: loop header
LB: loop body
LE: loop exit
PB: predicated region body
PF: predicated region fallthrough
CT: control target
= control target key end

     0   :  { %s383_s26 = smov 127   ;;  %s384_s27 = smov 1   ;;  %vm67_vm0 = vcmask 1043456   ;;  %v385_v2 = vmov 0   ;;  %vm63_vm1 = vcmask 31744   ;;  %v27_v6 = vlaneseq  ;;  %s504_s0 = inlined_call_operand.vmem [shape: f32[4,32], index: 0, kind: input, shape index: {}]   ;;  %s505_s3 = inlined_call_operand.vmem [shape: f32[4,1], index: 3, kind: input, shape index: {}]   ;;  %s506_s4 = inlined_call_operand.vmem [shape: f32[4,1], index: 4, kind: input, shape index: {}]   ;;  %s507_s1 = inlined_call_operand.vmem [shape: f32[3,4,4], index: 1, kind: input, shape index: {}]   ;;  %s508_s6 = inlined_call_operand.vmem [shape: f32[4,1], index: 6, kind: input, shape index: {}]   ;;  %s509_s2 = inlined_call_operand.vmem [shape: f32[3,4,4], index: 2, kind: input, shape index: {}]   ;;  %s510_s5 = inlined_call_operand.vmem [shape: f32[4,1], index: 5, kind: input, shape index: {}]   ;;  %s511_s7 = inlined_call_operand.vmem [shape: f32[4,32], index: 7, kind: output, shape index: {}]  }
   0x1   :  { %v429_v0 = vld [vmem:[%s504_s0] sm:$0xf]  ;;  %373 = vset.pattern.permute.xlu1 %v385_v2  ;;  %374 = vset.pattern.permute.xlu0 %v385_v2  ;;  %v354_v3 = vld [vmem:[%s507_s1 + $0x4] sm:$0xf]  ;;  %vm55_vm2 = vcmask 252928   ;;  %vm46_vm4 = vcmask 7168  }
   0x2   :  { %52 = vrot.lane.b32.xlu0 %v429_v0, %s383_s26  ;;  %v145_v1 = vld [vmem:[%s505_s3] sm:$0xf]  ;;  %355 = vmatpush.msk.msra.mxu0 %vm67_vm0, %v429_v0  ;;  %v28_v7 = vand.u32 127, %v27_v6  ;;  %v359_v12 = vld [vmem:[%s507_s1 + $0x8] sm:$0xf] }
   0x3   :  { %148 = vperm.xlu1 %373, %v145_v1   ;;  %356 = vmatmul.msk.f32.vlgmr.msra.gmra.mxu0 %vm63_vm1, %v354_v3  ;;  %v152_v4 = vld [vmem:[%s506_s4] sm:$0xf]  ;;  %v362_v62 = vld [vmem:[%s509_s2 + $0x4] sm:$0xf] }
   0x4   :  { %v300_v5 = vld [vmem:[%s508_s6] sm:$0xf]  ;;  %v33_v8 = vand.u32 15, %v28_v7  ;;  %v367_v7 = vld [vmem:[%s509_s2 + $0x8] sm:$0xf] }
   0x5   :  { %v60_v17 = vld [vmem:[%s507_s1] sm:$0xf] }
   0x6   :  { %vm450_vm3 = vcmp.eq.s32.totalorder %v33_v8, 15  ;;  %vm462_vm5 = vcmp.eq.s32.totalorder %v33_v8, 0  ;;  %v293_v63 = vld [vmem:[%s510_s5] sm:$0xf] }
   0x7   :  { %v210_v3 = vld [vmem:[%s509_s2] sm:$0xf] }
   0xa   :  { %43 = vrot.lane.b32.xlu0 %v429_v0, %s384_s27 }
   0xb   :  { %155 = vperm.xlu1 %373, %v152_v4  }
  0x12   :  { %296 = vperm.xlu0 %374, %v293_v63  }
  0x13   :  { %303 = vperm.xlu1 %373, %v300_v5  }
  0x74   :  { %v53_v10 = vpop.permute.xlu0 %52 }
  0x75   :  { %v56_v11 = vsel %vm55_vm2, %v53_v10, 0.0  ;;  %v149_v19 = vpop.permute.xlu1 %148 }
  0x76   :  { %v59_v13 = vsel %vm450_vm3, 0.0, %v56_v11 }
  0x77   :  { %360 = vmatpush.msk.msra.mxu2 %vm67_vm0, %v59_v13 }
  0x78   :  { %361 = vmatmul.msk.f32.vlgmr.msra.gmra.mxu2 %vm63_vm1, %v359_v12 }
  0x7c   :  { %v44_v15 = vpop.permute.xlu0 %43 }
  0x7d   :  { %v47_v16 = vsel %vm46_vm4, 0.0, %v44_v15  ;;  %v156_v26 = vpop.permute.xlu1 %155 }
  0x7e   :  { %v50_v18 = vsel %vm462_vm5, 0.0, %v47_v16 }
  0x7f   :  { %357 = vmatpush.msk.msra.mxu1 %vm67_vm0, %v50_v18 }
  0x80   :  { %358 = vmatmul.msk.f32.vlgmr.msra.gmra.mxu1 %vm63_vm1, %v60_v17  ;;  %v87_v20 = vpop.f32.mrf.mxu0 }
  0x84   :  { %v297_v14 = vpop.permute.xlu0 %296 }
  0x85   :  { %v304_v17 = vpop.permute.xlu1 %303 }
  0xfb   :  { %v141_v22 = vpop.f32.mrf.mxu2 }
  0xfd   :  { %v113_v21 = vpop.f32.mrf.mxu1 }
  0xfe   :  { %v114_v23 = vadd.f32 %v113_v21, %v87_v20 }
 0x100   :  { %v144_v24 = vadd.f32 %v141_v22, %v114_v23 }
 0x102   :  { %v151_v25 = vmul.f32 %v149_v19, %v144_v24 }
 0x104   :  { %v158_v27 = vadd.f32 %v156_v26, %v151_v25 }
 0x106   :  { %v160_v28 = vmul.f32 0.70710677, %v158_v27  ;;  %v159_v59 = vmul.f32 0.5, %v158_v27 }
 0x108   :  { %v161_v29 = vand.u32 2147483647, %v160_v28  ;;  %vm194_vm10 = vcmp.lt.f32.partialorder %v160_v28, 0.0 }
 0x10a   :  { %v162_v30 = vmul.f32 0.3275911, %v161_v29  ;;  %v188_v41 = vmul.f32 %v161_v29, %v161_v29 }
 0x10c   :  { %v163_v31 = vadd.f32 1.0, %v162_v30  ;;  %v189_v45 = vsub.f32 0.0, %v188_v41 }
 0x10e   :  { %375 = vrcp.f32 %v163_v31  ;;  %v175_v35 = vand.u32 2147483648, %v163_v31  ;;  %v173_v37 = vand.u32 2147483647, %v163_v31  ;;  %vm169_vm7 = vweird.f32 %v163_v31 }
 0x10f   :  { %v190_v48 = vmul.f32 1.442695, %v189_v45 }
 0x110   :  { %v176_v39 = vor.u32 1.1754944e-38, %v175_v35  ;;  %vm174_vm9 = vcmp.eq.f32.partialorder %v173_v37, 8.507059e+37 }
 0x111   :  { %377 = vpow2.f32 %v190_v48 }
 0x114   :  { %v376_v32 = vpop.eup %375 }
 0x115   :  { %v165_v33 = vmul.f32 %v376_v32, %v163_v31  ;;  %vm170_vm6 = vweird.f32 %v376_v32 }
 0x116   :  { %vm171_vm8 = vmor %vm169_vm7, %vm170_vm6 }
 0x117   :  { %v166_v34 = vsub.f32 1.0, %v165_v33  ;;  %v378_v54 = vpop.eup %377 }
 0x119   :  { %v167_v36 = vmul.f32 %v376_v32, %v166_v34 }
 0x11b   :  { %v168_v38 = vadd.f32 %v376_v32, %v167_v36 }
 0x11d   :  { %v172_v40 = vsel %vm171_vm8, %v376_v32, %v168_v38 }
 0x11e   :  { %v177_v42 = vsel %vm174_vm9, %v176_v39, %v172_v40 }
 0x11f   :  { %v179_v43 = vmul.f32 1.0614054, %v177_v42 }
 0x121   :  { %v180_v44 = vadd.f32 -1.4531521, %v179_v43 }
 0x123   :  { %v181_v46 = vmul.f32 %v180_v44, %v177_v42 }
 0x125   :  { %v182_v47 = vadd.f32 1.4214138, %v181_v46 }
 0x127   :  { %v183_v49 = vmul.f32 %v182_v47, %v177_v42 }
 0x129   :  { %v184_v50 = vadd.f32 -0.28449672, %v183_v49 }
 0x12b   :  { %v185_v51 = vmul.f32 %v184_v50, %v177_v42 }
 0x12d   :  { %v186_v52 = vadd.f32 0.2548296, %v185_v51 }
 0x12f   :  { %v187_v53 = vmul.f32 %v186_v52, %v177_v42 }
 0x131   :  { %v192_v55 = vmul.f32 %v378_v54, %v187_v53 }
 0x133   :  { %v193_v56 = vsub.f32 1.0, %v192_v55 }
 0x135   :  { %v195_v57 = vsub.f32 0.0, %v193_v56 }
 0x137   :  { %v196_v58 = vsel %vm194_vm10, %v195_v57, %v193_v56 }
 0x138   :  { %v197_v60 = vadd.f32 1.0, %v196_v58 }
 0x13a   :  { %v198_v61 = vmul.f32 %v197_v60, %v159_v59 }
 0x13c   :  { %200 = vrot.lane.b32.xlu2 %v198_v61, %s384_s27  ;;  %363 = vmatpush.msk.msra.mxu3 %vm67_vm0, %v198_v61 }
 0x13d   :  { %364 = vmatmul.msk.f32.vlgmr.msra.gmra.mxu3 %vm63_vm1, %v362_v62 }
 0x144   :  { %205 = vrot.lane.b32.xlu2 %v198_v61, %s383_s26 }
 0x196   :  { %v201_v1 = vpop.permute.xlu2 %200 }
 0x197   :  { %v203_v2 = vsel %vm46_vm4, 0.0, %v201_v1 }
 0x198   :  { %v204_v4 = vsel %vm462_vm5, 0.0, %v203_v2 }
 0x199   :  { %365 = vmatpush.msk.msrb.mxu0 %vm67_vm0, %v204_v4 }
 0x19a   :  { %366 = vmatmul.msk.f32.vlgmr.msrb.gmra.mxu0 %vm63_vm1, %v210_v3 }
 0x19e   :  { %v206_v5 = vpop.permute.xlu2 %205 }
 0x19f   :  { %v208_v6 = vsel %vm55_vm2, %v206_v5, 0.0 }
 0x1a0   :  { %v209_v8 = vsel %vm450_vm3, 0.0, %v208_v6 }
 0x1a1   :  { %368 = vmatpush.msk.msrb.mxu1 %vm67_vm0, %v209_v8  ;;  %vm348_vm0 = vcmask 257024  }
 0x1a2   :  { %369 = vmatmul.msk.f32.vlgmr.msrb.gmra.mxu1 %vm63_vm1, %v367_v7 }
 0x1c0   :  { %v235_v10 = vpop.f32.mrf.mxu3 }
 0x217   :  { %v261_v11 = vpop.f32.mrf.mxu0 }
 0x218   :  { %v262_v12 = vadd.f32 %v261_v11, %v235_v10 }
 0x21f   :  { %v289_v13 = vpop.f32.mrf.mxu1 }
 0x220   :  { %v292_v15 = vadd.f32 %v289_v13, %v262_v12 }
 0x222   :  { %v299_v16 = vmul.f32 %v297_v14, %v292_v15 }
 0x224   :  { %v306_v18 = vadd.f32 %v304_v17, %v299_v16 }
 0x226   :  { %v307_v19 = vadd.f32 %v306_v18, %v429_v0 }
 0x228   :  { %v309_v20 = vmul.f32 0.70710677, %v307_v19  ;;  %v308_v49 = vmul.f32 0.5, %v307_v19 }
 0x22a   :  { %v310_v21 = vand.u32 2147483647, %v309_v20  ;;  %vm343_vm15 = vcmp.lt.f32.partialorder %v309_v20, 0.0 }
 0x22c   :  { %v311_v22 = vmul.f32 0.3275911, %v310_v21  ;;  %v337_v0 = vmul.f32 %v310_v21, %v310_v21 }
 0x22e   :  { %v312_v9 = vadd.f32 1.0, %v311_v22  ;;  %v338_v35 = vsub.f32 0.0, %v337_v0 }
 0x230   :  { %379 = vrcp.f32 %v312_v9  ;;  %v324_v26 = vand.u32 2147483648, %v312_v9  ;;  %v322_v28 = vand.u32 2147483647, %v312_v9  ;;  %vm318_vm12 = vweird.f32 %v312_v9 }
 0x231   :  { %v339_v38 = vmul.f32 1.442695, %v338_v35 }
 0x232   :  { %v325_v30 = vor.u32 1.1754944e-38, %v324_v26  ;;  %vm323_vm14 = vcmp.eq.f32.partialorder %v322_v28, 8.507059e+37 }
 0x233   :  { %381 = vpow2.f32 %v339_v38 }
 0x236   :  { %v380_v23 = vpop.eup %379 }
 0x237   :  { %v314_v24 = vmul.f32 %v380_v23, %v312_v9  ;;  %vm319_vm11 = vweird.f32 %v380_v23 }
 0x238   :  { %vm320_vm13 = vmor %vm318_vm12, %vm319_vm11 }
 0x239   :  { %v315_v25 = vsub.f32 1.0, %v314_v24  ;;  %v382_v44 = vpop.eup %381 }
 0x23b   :  { %v316_v27 = vmul.f32 %v380_v23, %v315_v25 }
 0x23d   :  { %v317_v29 = vadd.f32 %v380_v23, %v316_v27 }
 0x23f   :  { %v321_v31 = vsel %vm320_vm13, %v380_v23, %v317_v29 }
 0x240   :  { %v326_v32 = vsel %vm323_vm14, %v325_v30, %v321_v31 }
 0x241   :  { %v328_v33 = vmul.f32 1.0614054, %v326_v32 }
 0x243   :  { %v329_v34 = vadd.f32 -1.4531521, %v328_v33 }
 0x245   :  { %v330_v36 = vmul.f32 %v329_v34, %v326_v32 }
 0x247   :  { %v331_v37 = vadd.f32 1.4214138, %v330_v36 }
 0x249   :  { %v332_v39 = vmul.f32 %v331_v37, %v326_v32 }
 0x24b   :  { %v333_v40 = vadd.f32 -0.28449672, %v332_v39 }
 0x24d   :  { %v334_v41 = vmul.f32 %v333_v40, %v326_v32 }
 0x24f   :  { %v335_v42 = vadd.f32 0.2548296, %v334_v41 }
 0x251   :  { %v336_v43 = vmul.f32 %v335_v42, %v326_v32 }
 0x253   :  { %v341_v45 = vmul.f32 %v382_v44, %v336_v43 }
 0x255   :  { %v342_v46 = vsub.f32 1.0, %v341_v45 }
 0x257   :  { %v344_v47 = vsub.f32 0.0, %v342_v46 }
 0x259   :  { %v345_v48 = vsel %vm343_vm15, %v344_v47, %v342_v46 }
 0x25a   :  { %v346_v50 = vadd.f32 1.0, %v345_v48 }
 0x25c   :  { %v347_v51 = vmul.f32 %v346_v50, %v308_v49 }
 0x25e   :  { %349 = vst.msk [vmem:[%s511_s7] sm:$0xf] %vm348_vm0, %v347_v51 }

</bundles_post_ra>
